<compile_context>
chip_gen: v7x
topology: tpu7x:2x2x1
jax: 0.10.0
libtpu: 0.0.40
codegen_flags: <defaults>
</compile_context>

<pallas_src>
import functools
import math

import jax
import jax.numpy as jnp
from jax.experimental import pallas as pl
from jax.experimental.pallas import tpu as pltpu


# ----------------------------------------------------------------------------
# In-kernel building blocks (operate on values; weights come from VMEM refs)
# ----------------------------------------------------------------------------
def _circ_conv(x3, w_ref, *, ks, dil):
    """Circular 'same'-padded dilated conv as ks per-tap MXU matmuls.

    x3:    (N, L, Cin) activation value (f32).
    w_ref: (ks, Cin, Cout) conv weight ref (bf16).
    Rolls stay on the XLU in f32; operands are cast to bf16 only at each dot;
    accumulation is f32.
    """
    N, L, Cin = x3.shape
    Cout = w_ref.shape[-1]
    pad = (dil * (ks - 1)) // 2            # PyTorch 'same' left padding (odd ks)
    acc = None
    for k in range(ks):
        off = k * dil - pad                # out[t] uses x[(t + off) mod L]
        xk = x3 if off % L == 0 else jnp.roll(x3, -off, axis=1)
        y = jnp.dot(xk.reshape(N * L, Cin).astype(jnp.bfloat16),
                    w_ref[k],
                    preferred_element_type=jnp.float32)
        acc = y if acc is None else acc + y
    return acc.reshape(N, L, Cout)


def _apply_block(x3, refs, *, ks, dil, has_res):
    """One CDILBlock: (conv -> dropout(id) -> BN -> ReLU) x2, plus residual."""
    w1, s1, b1, w2, s2, b2 = refs[:6]

    h = _circ_conv(x3, w1, ks=ks, dil=dil)
    h = jnp.maximum(h * s1[...] + b1[...], 0.0)      # BN1 (folded) + ReLU, f32
    out = _circ_conv(h, w2, ks=ks, dil=dil)
    out = jnp.maximum(out * s2[...] + b2[...], 0.0)  # BN2 (folded) + ReLU, f32

    if has_res:
        rw, rb = refs[6], refs[7]                    # (Cin,Cout) bf16, (1,1,Cout) f32
        N, L, Cin = x3.shape
        res = jnp.dot(x3.reshape(N * L, Cin).astype(jnp.bfloat16),
                      rw[...],
                      preferred_element_type=jnp.float32)
        res = res.reshape(N, L, rw.shape[-1]) + rb[...]
    else:
        res = x3

    # Reference computes relu(out) + res; `out` is already >= 0, so the extra
    # ReLU is a no-op and dropped (same semantics, one fewer VPU max).
    return out + res


# ----------------------------------------------------------------------------
# Fused whole-model kernel (per batch block): encoder(2*bb) -> subtract ->
# revoClf -> mean -> linear -> per-row gather
# ----------------------------------------------------------------------------
def fused_classifier_kernel(x_ref, idx_ref, clf_w_ref, clf_b_ref, *rest,
                            ks, enc_blocks, revo_blocks):
    o_ref = rest[-1]
    wrefs = rest[:-1]

    bb, _, L, cin = x_ref.shape
    # (bb, 2, L, Cin) -> (2*bb, L, Cin): weight-shared encoder runs once on
    # both halves of the block.  Leading-dim merge only (layout preserving).
    x = x_ref[...].astype(jnp.float32).reshape(2 * bb, L, cin)

    def run_stack(act, blocks, pos):
        for dil, has_res in blocks:
            n = 8 if has_res else 6
            act = _apply_block(act, wrefs[pos:pos + n],
                               ks=ks, dil=dil, has_res=has_res)
            pos += n
        return act, pos

    x, pos = run_stack(x, enc_blocks, 0)             # encoder
    x = x.reshape(bb, 2, L, x.shape[-1])
    y = x[:, 0] - x[:, 1]                            # enc(x1) - enc(x2)
    y, _ = run_stack(y, revo_blocks, pos)            # revoClf

    # Head: mean over L (torch dim=2), linear, per-row gather of one logit.
    feat = jnp.mean(y, axis=1)                       # (bb, clf_dim) f32
    logits = jnp.dot(feat.astype(jnp.bfloat16), clf_w_ref[...],
                     preferred_element_type=jnp.float32) + clf_b_ref[...]
    num_out = logits.shape[-1]
    cols = jax.lax.broadcasted_iota(jnp.int32, (bb, num_out), 1)
    idx = idx_ref[...].reshape(bb, 1)
    picked = jnp.where(cols == idx, logits, 0.0)
    o_ref[...] = jnp.sum(picked, axis=1, keepdims=True).reshape(bb, 1, 1)


# ----------------------------------------------------------------------------
# Wrapper: packing, BlockSpecs, grid, VMEM budget
# ----------------------------------------------------------------------------
def _nbytes(a):
    return a.size * a.dtype.itemsize


def classifier_forward(params, x1, x2, idx_linear, *, ks, batch_block=1):
    B, L, cin = x1.shape
    if B % batch_block:
        raise ValueError("batch_block must divide the batch size")

    # (B, 2, L, Cin): each sample keeps its x1/x2 halves adjacent so one grid
    # block carries both (no in-kernel concat, no stale x1/x2 refs kept live).
    x = jnp.stack([x1.astype(jnp.float32), x2.astype(jnp.float32)], axis=1)
    idx = idx_linear.reshape(B, 1, 1).astype(jnp.int32)

    inputs = [x, idx]
    in_specs = [
        pl.BlockSpec((batch_block, 2, L, cin), lambda i: (i, 0, 0, 0)),
        pl.BlockSpec((batch_block, 1, 1), lambda i: (i, 0, 0)),
    ]

    def add_full(arr):
        """Weight input: full array per grid step, constant index_map."""
        inputs.append(arr)
        in_specs.append(
            pl.BlockSpec(arr.shape, lambda i, _nd=arr.ndim: (0,) * _nd))

    add_full(params["clf_w"].astype(jnp.bfloat16))   # (clf_dim, out) bf16
    add_full(params["clf_b"])                        # (1, out) f32

    enc_meta, revo_meta = [], []

    def add_stack(layer_params, meta):
        for i, p in enumerate(layer_params):
            hdim = p["w1"].shape[-1]
            cout = p["w2"].shape[-1]
            add_full(p["w1"].astype(jnp.bfloat16))   # (ks, Cin, H) bf16
            add_full(p["s1"].reshape(1, 1, hdim))    # folded BN scale, f32
            add_full(p["b1"].reshape(1, 1, hdim))    # folded BN bias,  f32
            add_full(p["w2"].astype(jnp.bfloat16))   # (ks, H, Cout) bf16
            add_full(p["s2"].reshape(1, 1, cout))
            add_full(p["b2"].reshape(1, 1, cout))
            has_res = "rw" in p
            if has_res:
                add_full(p["rw"].astype(jnp.bfloat16))   # (Cin, Cout) bf16
                add_full(p["rb"].reshape(1, 1, cout))    # (1,1,Cout) f32
            meta.append((2 ** i, has_res))               # dilation = 2**i

    add_stack(params["encoder"], enc_meta)
    add_stack(params["revo"], revo_meta)

    kernel = functools.partial(
        fused_classifier_kernel, ks=ks,
        enc_blocks=tuple(enc_meta), revo_blocks=tuple(revo_meta))

    # VMEM budget re-derived against v7x's 64 MiB physical VMEM: per-step
    # working set = double-buffered input block + resident weights + a handful
    # of live activation slabs at the widest channel count.
    all_blocks = list(params["encoder"]) + list(params["revo"])
    max_c = max([cin]
                + [p["w1"].shape[-1] for p in all_blocks]
                + [p["w2"].shape[-1] for p in all_blocks])
    act_bytes = 2 * batch_block * L * max_c * 4
    weight_bytes = sum(_nbytes(a) for a in inputs[2:])
    inblk_bytes = batch_block * (2 * L * cin + 1) * 4
    est = 2 * inblk_bytes + weight_bytes + 12 * act_bytes
    vmem_limit = int(min(max(est, 32 << 20), 64 << 20))

    out = pl.pallas_call(
        kernel,
        out_shape=jax.ShapeDtypeStruct((B, 1, 1), jnp.float32),
        grid=(B // batch_block,),
        in_specs=in_specs,
        out_specs=pl.BlockSpec((batch_block, 1, 1), lambda i: (i, 0, 0)),
        compiler_params=pltpu.CompilerParams(
            dimension_semantics=("parallel",),
            vmem_limit_bytes=vmem_limit),
    )(*inputs)
    return out.reshape(B, 1)


# ----------------------------------------------------------------------------
# Parameter initialization (deterministic, synthetic)
# ----------------------------------------------------------------------------
def _conv_weight(key, ks, cin, cout):
    # torch Conv1d weight (cout, cin, ks) with kaiming-uniform-ish bound,
    # stored as (ks, cin, cout) for lane-friendly per-tap matmuls.
    bound = 1.0 / math.sqrt(cin * ks)
    return jax.random.uniform(key, (ks, cin, cout), jnp.float32, -bound, bound)


def _bn_scale_bias(keys, c, eps=1e-5):
    kg, kb, km, kv = keys
    gamma = 1.0 + 0.1 * jax.random.normal(kg, (1, c), jnp.float32)
    beta = 0.1 * jax.random.normal(kb, (1, c), jnp.float32)
    mean = 0.1 * jax.random.normal(km, (1, c), jnp.float32)
    var = 1.0 + 0.1 * jnp.abs(jax.random.normal(kv, (1, c), jnp.float32))
    scale = gamma / jnp.sqrt(var + eps)
    bias = beta - mean * scale
    return scale, bias


def init_block_params(key, c_in, c_out, hdim, ks):
    ks_ = jax.random.split(key, 13)
    p = {}
    p["w1"] = _conv_weight(ks_[0], ks, c_in, hdim)
    p["s1"], p["b1"] = _bn_scale_bias(ks_[1:5], hdim)
    p["w2"] = _conv_weight(ks_[5], ks, hdim, c_out)
    p["s2"], p["b2"] = _bn_scale_bias(ks_[6:10], c_out)
    if c_in != c_out:
        bound = 1.0 / math.sqrt(c_in)
        p["rw"] = jax.random.uniform(ks_[10], (c_in, c_out), jnp.float32,
                                     -bound, bound)
        p["rb"] = jax.random.uniform(ks_[11], (1, c_out), jnp.float32,
                                     -bound, bound)
    return p


def init_layer_params(key, dim_in, dim_out_list, hdim, ks):
    keys = jax.random.split(key, len(dim_out_list))
    params = []
    for i, co in enumerate(dim_out_list):
        ci = dim_in if i == 0 else dim_out_list[i - 1]
        params.append(init_block_params(keys[i], ci, co, hdim, ks))
    return params


def init_classifier_params(key, dim_in, dim_out, clf_dim, layers, ks, output_size):
    k_enc, k_revo, k_w, k_b = jax.random.split(key, 4)
    return {
        "encoder": init_layer_params(k_enc, dim_in, [dim_out] * layers,
                                     dim_out * 2, ks),
        "revo": init_layer_params(k_revo, dim_out, [clf_dim] * layers,
                                  clf_dim * 2, ks),
        # torch Linear(clf_dim, out): weight (out, in) ~ N(0, 0.01); stored (in, out)
        "clf_w": 0.01 * jax.random.normal(k_w, (clf_dim, output_size), jnp.float32),
        "clf_b": 0.01 * jax.random.normal(k_b, (1, output_size), jnp.float32),
    }


if __name__ == "__main__":
    # small configuration consistent with the module (L multiple of 8)
    B, L = 2, 16
    dim_in, dim_out, clf_dim = 4, 8, 16
    layers, ks, output_size = 2, 3, 10

    root = jax.random.PRNGKey(0)
    k_params, k_x1, k_x2, k_idx = jax.random.split(root, 4)

    params = init_classifier_params(k_params, dim_in, dim_out, clf_dim,
                                    layers, ks, output_size)

    # inputs in (B, L, C) layout (channels on the lane axis; see top comment)
    x1 = jax.random.normal(k_x1, (B, L, dim_in), jnp.float32)
    x2 = jax.random.normal(k_x2, (B, L, dim_in), jnp.float32)
    # idx_linear: one class index per batch row, shaped (B, 1) like
    # idx_linear.unsqueeze(0).t() in the reference
    idx_linear = jax.random.randint(k_idx, (B, 1), 0, output_size,
                                    dtype=jnp.int32)

    out = classifier_forward(params, x1, x2, idx_linear, ks=ks, batch_block=1)
    out = jax.block_until_ready(out)
    assert out.shape == (B, 1)
    assert out.dtype == jnp.float32
    print("KERNEL_OK")
</pallas_src>

<mosaic_0001>
module attributes {stable_mosaic.version = 11 : i64} {
  func.func @fused_classifier_kernel(%arg0: i32, %arg1: memref<1x2x16x4xf32, #tpu.memory_space<vmem>>, %arg2: memref<1x1x1xi32, #tpu.memory_space<vmem>>, %arg3: memref<16x10xbf16, #tpu.memory_space<vmem>>, %arg4: memref<1x10xf32, #tpu.memory_space<vmem>>, %arg5: memref<3x4x16xbf16, #tpu.memory_space<vmem>>, %arg6: memref<1x1x16xf32, #tpu.memory_space<vmem>>, %arg7: memref<1x1x16xf32, #tpu.memory_space<vmem>>, %arg8: memref<3x16x8xbf16, #tpu.memory_space<vmem>>, %arg9: memref<1x1x8xf32, #tpu.memory_space<vmem>>, %arg10: memref<1x1x8xf32, #tpu.memory_space<vmem>>, %arg11: memref<4x8xbf16, #tpu.memory_space<vmem>>, %arg12: memref<1x1x8xf32, #tpu.memory_space<vmem>>, %arg13: memref<3x8x16xbf16, #tpu.memory_space<vmem>>, %arg14: memref<1x1x16xf32, #tpu.memory_space<vmem>>, %arg15: memref<1x1x16xf32, #tpu.memory_space<vmem>>, %arg16: memref<3x16x8xbf16, #tpu.memory_space<vmem>>, %arg17: memref<1x1x8xf32, #tpu.memory_space<vmem>>, %arg18: memref<1x1x8xf32, #tpu.memory_space<vmem>>, %arg19: memref<3x8x32xbf16, #tpu.memory_space<vmem>>, %arg20: memref<1x1x32xf32, #tpu.memory_space<vmem>>, %arg21: memref<1x1x32xf32, #tpu.memory_space<vmem>>, %arg22: memref<3x32x16xbf16, #tpu.memory_space<vmem>>, %arg23: memref<1x1x16xf32, #tpu.memory_space<vmem>>, %arg24: memref<1x1x16xf32, #tpu.memory_space<vmem>>, %arg25: memref<8x16xbf16, #tpu.memory_space<vmem>>, %arg26: memref<1x1x16xf32, #tpu.memory_space<vmem>>, %arg27: memref<3x16x32xbf16, #tpu.memory_space<vmem>>, %arg28: memref<1x1x32xf32, #tpu.memory_space<vmem>>, %arg29: memref<1x1x32xf32, #tpu.memory_space<vmem>>, %arg30: memref<3x32x16xbf16, #tpu.memory_space<vmem>>, %arg31: memref<1x1x16xf32, #tpu.memory_space<vmem>>, %arg32: memref<1x1x16xf32, #tpu.memory_space<vmem>>, %arg33: memref<1x1x1xf32, #tpu.memory_space<vmem>>) attributes {dimension_semantics = [#tpu.dimension_semantics<parallel>], iteration_bounds = array<i64: 2>, scalar_prefetch = 0 : i64, scratch_operands = 0 : i64, tpu.core_type = #tpu.core_type<tc>, window_params = [{transform_indices = @transform_0, window_bounds = array<i64: 1, 2, 16, 4>}, {transform_indices = @transform_1, window_bounds = array<i64: 1, 1, 1>}, {pipeline_mode = #tpu.pipeline_mode<synchronous>, transform_indices = @transform_2, window_bounds = array<i64: 16, 10>}, {pipeline_mode = #tpu.pipeline_mode<synchronous>, transform_indices = @transform_3, window_bounds = array<i64: 1, 10>}, {pipeline_mode = #tpu.pipeline_mode<synchronous>, transform_indices = @transform_4, window_bounds = array<i64: 3, 4, 16>}, {pipeline_mode = #tpu.pipeline_mode<synchronous>, transform_indices = @transform_5, window_bounds = array<i64: 1, 1, 16>}, {pipeline_mode = #tpu.pipeline_mode<synchronous>, transform_indices = @transform_6, window_bounds = array<i64: 1, 1, 16>}, {pipeline_mode = #tpu.pipeline_mode<synchronous>, transform_indices = @transform_7, window_bounds = array<i64: 3, 16, 8>}, {pipeline_mode = #tpu.pipeline_mode<synchronous>, transform_indices = @transform_8, window_bounds = array<i64: 1, 1, 8>}, {pipeline_mode = #tpu.pipeline_mode<synchronous>, transform_indices = @transform_9, window_bounds = array<i64: 1, 1, 8>}, {pipeline_mode = #tpu.pipeline_mode<synchronous>, transform_indices = @transform_10, window_bounds = array<i64: 4, 8>}, {pipeline_mode = #tpu.pipeline_mode<synchronous>, transform_indices = @transform_11, window_bounds = array<i64: 1, 1, 8>}, {pipeline_mode = #tpu.pipeline_mode<synchronous>, transform_indices = @transform_12, window_bounds = array<i64: 3, 8, 16>}, {pipeline_mode = #tpu.pipeline_mode<synchronous>, transform_indices = @transform_13, window_bounds = array<i64: 1, 1, 16>}, {pipeline_mode = #tpu.pipeline_mode<synchronous>, transform_indices = @transform_14, window_bounds = array<i64: 1, 1, 16>}, {pipeline_mode = #tpu.pipeline_mode<synchronous>, transform_indices = @transform_15, window_bounds = array<i64: 3, 16, 8>}, {pipeline_mode = #tpu.pipeline_mode<synchronous>, transform_indices = @transform_16, window_bounds = array<i64: 1, 1, 8>}, {pipeline_mode = #tpu.pipeline_mode<synchronous>, transform_indices = @transform_17, window_bounds = array<i64: 1, 1, 8>}, {pipeline_mode = #tpu.pipeline_mode<synchronous>, transform_indices = @transform_18, window_bounds = array<i64: 3, 8, 32>}, {pipeline_mode = #tpu.pipeline_mode<synchronous>, transform_indices = @transform_19, window_bounds = array<i64: 1, 1, 32>}, {pipeline_mode = #tpu.pipeline_mode<synchronous>, transform_indices = @transform_20, window_bounds = array<i64: 1, 1, 32>}, {pipeline_mode = #tpu.pipeline_mode<synchronous>, transform_indices = @transform_21, window_bounds = array<i64: 3, 32, 16>}, {pipeline_mode = #tpu.pipeline_mode<synchronous>, transform_indices = @transform_22, window_bounds = array<i64: 1, 1, 16>}, {pipeline_mode = #tpu.pipeline_mode<synchronous>, transform_indices = @transform_23, window_bounds = array<i64: 1, 1, 16>}, {pipeline_mode = #tpu.pipeline_mode<synchronous>, transform_indices = @transform_24, window_bounds = array<i64: 8, 16>}, {pipeline_mode = #tpu.pipeline_mode<synchronous>, transform_indices = @transform_25, window_bounds = array<i64: 1, 1, 16>}, {pipeline_mode = #tpu.pipeline_mode<synchronous>, transform_indices = @transform_26, window_bounds = array<i64: 3, 16, 32>}, {pipeline_mode = #tpu.pipeline_mode<synchronous>, transform_indices = @transform_27, window_bounds = array<i64: 1, 1, 32>}, {pipeline_mode = #tpu.pipeline_mode<synchronous>, transform_indices = @transform_28, window_bounds = array<i64: 1, 1, 32>}, {pipeline_mode = #tpu.pipeline_mode<synchronous>, transform_indices = @transform_29, window_bounds = array<i64: 3, 32, 16>}, {pipeline_mode = #tpu.pipeline_mode<synchronous>, transform_indices = @transform_30, window_bounds = array<i64: 1, 1, 16>}, {pipeline_mode = #tpu.pipeline_mode<synchronous>, transform_indices = @transform_31, window_bounds = array<i64: 1, 1, 16>}, {transform_indices = @transform_32, window_bounds = array<i64: 1, 1, 1>}]} {
    %c0 = arith.constant 0 : index
    %c0_0 = arith.constant 0 : index
    %c0_1 = arith.constant 0 : index
    %c0_2 = arith.constant 0 : index
    %0 = vector.load %arg1[%c0, %c0_0, %c0_1, %c0_2] : memref<1x2x16x4xf32, #tpu.memory_space<vmem>>, vector<1x2x16x4xf32>
    %1 = vector.shape_cast %0 : vector<1x2x16x4xf32> to vector<2x16x4xf32>
    %2 = vector.extract_strided_slice %1 {offsets = [0, 15, 0], sizes = [2, 1, 4], strides = [1, 1, 1]} : vector<2x16x4xf32> to vector<2x1x4xf32>
    %3 = vector.extract_strided_slice %1 {offsets = [0, 0, 0], sizes = [2, 15, 4], strides = [1, 1, 1]} : vector<2x16x4xf32> to vector<2x15x4xf32>
    %4 = tpu.concatenate %2, %3 in 1 : vector<2x1x4xf32>, vector<2x15x4xf32> -> vector<2x16x4xf32>
    %5 = vector.shape_cast %4 : vector<2x16x4xf32> to vector<32x4xf32>
    %6 = arith.truncf %5 : vector<32x4xf32> to vector<32x4xbf16>
    %c0_3 = arith.constant 0 : index
    %c0_4 = arith.constant 0 : index
    %c0_5 = arith.constant 0 : index
    %7 = vector.load %arg5[%c0_3, %c0_4, %c0_5] : memref<3x4x16xbf16, #tpu.memory_space<vmem>>, vector<1x4x16xbf16>
    %8 = vector.shape_cast %7 : vector<1x4x16xbf16> to vector<4x16xbf16>
    %cst = arith.constant dense<0.000000e+00> : vector<32x16xf32>
    %9 = tpu.matmul %6, %8, %cst {dimension_numbers = #tpu.dot_dimension_numbers<[1], [0], [0], [1], [0, 0, 1, 1], [], []>} : vector<32x4xbf16>, vector<4x16xbf16>, vector<32x16xf32> -> vector<32x16xf32>
    %10 = vector.shape_cast %1 : vector<2x16x4xf32> to vector<32x4xf32>
    %11 = arith.truncf %10 : vector<32x4xf32> to vector<32x4xbf16>
    %c1 = arith.constant 1 : index
    %c0_6 = arith.constant 0 : index
    %c0_7 = arith.constant 0 : index
    %12 = vector.load %arg5[%c1, %c0_6, %c0_7] : memref<3x4x16xbf16, #tpu.memory_space<vmem>>, vector<1x4x16xbf16>
    %13 = vector.shape_cast %12 : vector<1x4x16xbf16> to vector<4x16xbf16>
    %cst_8 = arith.constant dense<0.000000e+00> : vector<32x16xf32>
    %14 = tpu.matmul %11, %13, %cst_8 {dimension_numbers = #tpu.dot_dimension_numbers<[1], [0], [0], [1], [0, 0, 1, 1], [], []>} : vector<32x4xbf16>, vector<4x16xbf16>, vector<32x16xf32> -> vector<32x16xf32>
    %15 = arith.addf %9, %14 : vector<32x16xf32>
    %16 = vector.extract_strided_slice %1 {offsets = [0, 1, 0], sizes = [2, 15, 4], strides = [1, 1, 1]} : vector<2x16x4xf32> to vector<2x15x4xf32>
    %17 = vector.extract_strided_slice %1 {offsets = [0, 0, 0], sizes = [2, 1, 4], strides = [1, 1, 1]} : vector<2x16x4xf32> to vector<2x1x4xf32>
    %18 = tpu.concatenate %16, %17 in 1 : vector<2x15x4xf32>, vector<2x1x4xf32> -> vector<2x16x4xf32>
    %19 = vector.shape_cast %18 : vector<2x16x4xf32> to vector<32x4xf32>
    %20 = arith.truncf %19 : vector<32x4xf32> to vector<32x4xbf16>
    %c2 = arith.constant 2 : index
    %c0_9 = arith.constant 0 : index
    %c0_10 = arith.constant 0 : index
    %21 = vector.load %arg5[%c2, %c0_9, %c0_10] : memref<3x4x16xbf16, #tpu.memory_space<vmem>>, vector<1x4x16xbf16>
    %22 = vector.shape_cast %21 : vector<1x4x16xbf16> to vector<4x16xbf16>
    %cst_11 = arith.constant dense<0.000000e+00> : vector<32x16xf32>
    %23 = tpu.matmul %20, %22, %cst_11 {dimension_numbers = #tpu.dot_dimension_numbers<[1], [0], [0], [1], [0, 0, 1, 1], [], []>} : vector<32x4xbf16>, vector<4x16xbf16>, vector<32x16xf32> -> vector<32x16xf32>
    %24 = arith.addf %15, %23 : vector<32x16xf32>
    %25 = vector.shape_cast %24 : vector<32x16xf32> to vector<2x16x16xf32>
    %c0_12 = arith.constant 0 : index
    %c0_13 = arith.constant 0 : index
    %c0_14 = arith.constant 0 : index
    %26 = vector.load %arg6[%c0_12, %c0_13, %c0_14] : memref<1x1x16xf32, #tpu.memory_space<vmem>>, vector<1x1x16xf32>
    %27 = vector.broadcast %26 : vector<1x1x16xf32> to vector<2x16x16xf32>
    %28 = arith.mulf %25, %27 : vector<2x16x16xf32>
    %c0_15 = arith.constant 0 : index
    %c0_16 = arith.constant 0 : index
    %c0_17 = arith.constant 0 : index
    %29 = vector.load %arg7[%c0_15, %c0_16, %c0_17] : memref<1x1x16xf32, #tpu.memory_space<vmem>>, vector<1x1x16xf32>
    %30 = vector.broadcast %29 : vector<1x1x16xf32> to vector<2x16x16xf32>
    %31 = arith.addf %28, %30 : vector<2x16x16xf32>
    %cst_18 = arith.constant 0.000000e+00 : f32
    %32 = vector.broadcast %cst_18 : f32 to vector<2x16x16xf32>
    %33 = arith.maximumf %31, %32 : vector<2x16x16xf32>
    %34 = vector.extract_strided_slice %33 {offsets = [0, 15, 0], sizes = [2, 1, 16], strides = [1, 1, 1]} : vector<2x16x16xf32> to vector<2x1x16xf32>
    %35 = vector.extract_strided_slice %33 {offsets = [0, 0, 0], sizes = [2, 15, 16], strides = [1, 1, 1]} : vector<2x16x16xf32> to vector<2x15x16xf32>
    %36 = tpu.concatenate %34, %35 in 1 : vector<2x1x16xf32>, vector<2x15x16xf32> -> vector<2x16x16xf32>
    %37 = vector.shape_cast %36 : vector<2x16x16xf32> to vector<32x16xf32>
    %38 = arith.truncf %37 : vector<32x16xf32> to vector<32x16xbf16>
    %c0_19 = arith.constant 0 : index
    %c0_20 = arith.constant 0 : index
    %c0_21 = arith.constant 0 : index
    %39 = vector.load %arg8[%c0_19, %c0_20, %c0_21] : memref<3x16x8xbf16, #tpu.memory_space<vmem>>, vector<1x16x8xbf16>
    %40 = vector.shape_cast %39 : vector<1x16x8xbf16> to vector<16x8xbf16>
    %cst_22 = arith.constant dense<0.000000e+00> : vector<32x8xf32>
    %41 = tpu.matmul %38, %40, %cst_22 {dimension_numbers = #tpu.dot_dimension_numbers<[1], [0], [0], [1], [0, 0, 1, 1], [], []>} : vector<32x16xbf16>, vector<16x8xbf16>, vector<32x8xf32> -> vector<32x8xf32>
    %42 = vector.shape_cast %33 : vector<2x16x16xf32> to vector<32x16xf32>
    %43 = arith.truncf %42 : vector<32x16xf32> to vector<32x16xbf16>
    %c1_23 = arith.constant 1 : index
    %c0_24 = arith.constant 0 : index
    %c0_25 = arith.constant 0 : index
    %44 = vector.load %arg8[%c1_23, %c0_24, %c0_25] : memref<3x16x8xbf16, #tpu.memory_space<vmem>>, vector<1x16x8xbf16>
    %45 = vector.shape_cast %44 : vector<1x16x8xbf16> to vector<16x8xbf16>
    %cst_26 = arith.constant dense<0.000000e+00> : vector<32x8xf32>
    %46 = tpu.matmul %43, %45, %cst_26 {dimension_numbers = #tpu.dot_dimension_numbers<[1], [0], [0], [1], [0, 0, 1, 1], [], []>} : vector<32x16xbf16>, vector<16x8xbf16>, vector<32x8xf32> -> vector<32x8xf32>
    %47 = arith.addf %41, %46 : vector<32x8xf32>
    %48 = vector.extract_strided_slice %33 {offsets = [0, 1, 0], sizes = [2, 15, 16], strides = [1, 1, 1]} : vector<2x16x16xf32> to vector<2x15x16xf32>
    %49 = vector.extract_strided_slice %33 {offsets = [0, 0, 0], sizes = [2, 1, 16], strides = [1, 1, 1]} : vector<2x16x16xf32> to vector<2x1x16xf32>
    %50 = tpu.concatenate %48, %49 in 1 : vector<2x15x16xf32>, vector<2x1x16xf32> -> vector<2x16x16xf32>
    %51 = vector.shape_cast %50 : vector<2x16x16xf32> to vector<32x16xf32>
    %52 = arith.truncf %51 : vector<32x16xf32> to vector<32x16xbf16>
    %c2_27 = arith.constant 2 : index
    %c0_28 = arith.constant 0 : index
    %c0_29 = arith.constant 0 : index
    %53 = vector.load %arg8[%c2_27, %c0_28, %c0_29] : memref<3x16x8xbf16, #tpu.memory_space<vmem>>, vector<1x16x8xbf16>
    %54 = vector.shape_cast %53 : vector<1x16x8xbf16> to vector<16x8xbf16>
    %cst_30 = arith.constant dense<0.000000e+00> : vector<32x8xf32>
    %55 = tpu.matmul %52, %54, %cst_30 {dimension_numbers = #tpu.dot_dimension_numbers<[1], [0], [0], [1], [0, 0, 1, 1], [], []>} : vector<32x16xbf16>, vector<16x8xbf16>, vector<32x8xf32> -> vector<32x8xf32>
    %56 = arith.addf %47, %55 : vector<32x8xf32>
    %57 = vector.shape_cast %56 : vector<32x8xf32> to vector<2x16x8xf32>
    %c0_31 = arith.constant 0 : index
    %c0_32 = arith.constant 0 : index
    %c0_33 = arith.constant 0 : index
    %58 = vector.load %arg9[%c0_31, %c0_32, %c0_33] : memref<1x1x8xf32, #tpu.memory_space<vmem>>, vector<1x1x8xf32>
    %59 = vector.broadcast %58 : vector<1x1x8xf32> to vector<2x16x8xf32>
    %60 = arith.mulf %57, %59 : vector<2x16x8xf32>
    %c0_34 = arith.constant 0 : index
    %c0_35 = arith.constant 0 : index
    %c0_36 = arith.constant 0 : index
    %61 = vector.load %arg10[%c0_34, %c0_35, %c0_36] : memref<1x1x8xf32, #tpu.memory_space<vmem>>, vector<1x1x8xf32>
    %62 = vector.broadcast %61 : vector<1x1x8xf32> to vector<2x16x8xf32>
    %63 = arith.addf %60, %62 : vector<2x16x8xf32>
    %cst_37 = arith.constant 0.000000e+00 : f32
    %64 = vector.broadcast %cst_37 : f32 to vector<2x16x8xf32>
    %65 = arith.maximumf %63, %64 : vector<2x16x8xf32>
    %66 = vector.shape_cast %1 : vector<2x16x4xf32> to vector<32x4xf32>
    %67 = arith.truncf %66 : vector<32x4xf32> to vector<32x4xbf16>
    %c0_38 = arith.constant 0 : index
    %c0_39 = arith.constant 0 : index
    %68 = vector.load %arg11[%c0_38, %c0_39] : memref<4x8xbf16, #tpu.memory_space<vmem>>, vector<4x8xbf16>
    %cst_40 = arith.constant dense<0.000000e+00> : vector<32x8xf32>
    %69 = tpu.matmul %67, %68, %cst_40 {dimension_numbers = #tpu.dot_dimension_numbers<[1], [0], [0], [1], [0, 0, 1, 1], [], []>} : vector<32x4xbf16>, vector<4x8xbf16>, vector<32x8xf32> -> vector<32x8xf32>
    %70 = vector.shape_cast %69 : vector<32x8xf32> to vector<2x16x8xf32>
    %c0_41 = arith.constant 0 : index
    %c0_42 = arith.constant 0 : index
    %c0_43 = arith.constant 0 : index
    %71 = vector.load %arg12[%c0_41, %c0_42, %c0_43] : memref<1x1x8xf32, #tpu.memory_space<vmem>>, vector<1x1x8xf32>
    %72 = vector.broadcast %71 : vector<1x1x8xf32> to vector<2x16x8xf32>
    %73 = arith.addf %70, %72 : vector<2x16x8xf32>
    %74 = arith.addf %65, %73 : vector<2x16x8xf32>
    %75 = vector.extract_strided_slice %74 {offsets = [0, 14, 0], sizes = [2, 2, 8], strides = [1, 1, 1]} : vector<2x16x8xf32> to vector<2x2x8xf32>
    %76 = vector.extract_strided_slice %74 {offsets = [0, 0, 0], sizes = [2, 14, 8], strides = [1, 1, 1]} : vector<2x16x8xf32> to vector<2x14x8xf32>
    %77 = tpu.concatenate %75, %76 in 1 : vector<2x2x8xf32>, vector<2x14x8xf32> -> vector<2x16x8xf32>
    %78 = vector.shape_cast %77 : vector<2x16x8xf32> to vector<32x8xf32>
    %79 = arith.truncf %78 : vector<32x8xf32> to vector<32x8xbf16>
    %c0_44 = arith.constant 0 : index
    %c0_45 = arith.constant 0 : index
    %c0_46 = arith.constant 0 : index
    %80 = vector.load %arg13[%c0_44, %c0_45, %c0_46] : memref<3x8x16xbf16, #tpu.memory_space<vmem>>, vector<1x8x16xbf16>
    %81 = vector.shape_cast %80 : vector<1x8x16xbf16> to vector<8x16xbf16>
    %cst_47 = arith.constant dense<0.000000e+00> : vector<32x16xf32>
    %82 = tpu.matmul %79, %81, %cst_47 {dimension_numbers = #tpu.dot_dimension_numbers<[1], [0], [0], [1], [0, 0, 1, 1], [], []>} : vector<32x8xbf16>, vector<8x16xbf16>, vector<32x16xf32> -> vector<32x16xf32>
    %83 = vector.shape_cast %74 : vector<2x16x8xf32> to vector<32x8xf32>
    %84 = arith.truncf %83 : vector<32x8xf32> to vector<32x8xbf16>
    %c1_48 = arith.constant 1 : index
    %c0_49 = arith.constant 0 : index
    %c0_50 = arith.constant 0 : index
    %85 = vector.load %arg13[%c1_48, %c0_49, %c0_50] : memref<3x8x16xbf16, #tpu.memory_space<vmem>>, vector<1x8x16xbf16>
    %86 = vector.shape_cast %85 : vector<1x8x16xbf16> to vector<8x16xbf16>
    %cst_51 = arith.constant dense<0.000000e+00> : vector<32x16xf32>
    %87 = tpu.matmul %84, %86, %cst_51 {dimension_numbers = #tpu.dot_dimension_numbers<[1], [0], [0], [1], [0, 0, 1, 1], [], []>} : vector<32x8xbf16>, vector<8x16xbf16>, vector<32x16xf32> -> vector<32x16xf32>
    %88 = arith.addf %82, %87 : vector<32x16xf32>
    %89 = vector.extract_strided_slice %74 {offsets = [0, 2, 0], sizes = [2, 14, 8], strides = [1, 1, 1]} : vector<2x16x8xf32> to vector<2x14x8xf32>
    %90 = vector.extract_strided_slice %74 {offsets = [0, 0, 0], sizes = [2, 2, 8], strides = [1, 1, 1]} : vector<2x16x8xf32> to vector<2x2x8xf32>
    %91 = tpu.concatenate %89, %90 in 1 : vector<2x14x8xf32>, vector<2x2x8xf32> -> vector<2x16x8xf32>
    %92 = vector.shape_cast %91 : vector<2x16x8xf32> to vector<32x8xf32>
    %93 = arith.truncf %92 : vector<32x8xf32> to vector<32x8xbf16>
    %c2_52 = arith.constant 2 : index
    %c0_53 = arith.constant 0 : index
    %c0_54 = arith.constant 0 : index
    %94 = vector.load %arg13[%c2_52, %c0_53, %c0_54] : memref<3x8x16xbf16, #tpu.memory_space<vmem>>, vector<1x8x16xbf16>
    %95 = vector.shape_cast %94 : vector<1x8x16xbf16> to vector<8x16xbf16>
    %cst_55 = arith.constant dense<0.000000e+00> : vector<32x16xf32>
    %96 = tpu.matmul %93, %95, %cst_55 {dimension_numbers = #tpu.dot_dimension_numbers<[1], [0], [0], [1], [0, 0, 1, 1], [], []>} : vector<32x8xbf16>, vector<8x16xbf16>, vector<32x16xf32> -> vector<32x16xf32>
    %97 = arith.addf %88, %96 : vector<32x16xf32>
    %98 = vector.shape_cast %97 : vector<32x16xf32> to vector<2x16x16xf32>
    %c0_56 = arith.constant 0 : index
    %c0_57 = arith.constant 0 : index
    %c0_58 = arith.constant 0 : index
    %99 = vector.load %arg14[%c0_56, %c0_57, %c0_58] : memref<1x1x16xf32, #tpu.memory_space<vmem>>, vector<1x1x16xf32>
    %100 = vector.broadcast %99 : vector<1x1x16xf32> to vector<2x16x16xf32>
    %101 = arith.mulf %98, %100 : vector<2x16x16xf32>
    %c0_59 = arith.constant 0 : index
    %c0_60 = arith.constant 0 : index
    %c0_61 = arith.constant 0 : index
    %102 = vector.load %arg15[%c0_59, %c0_60, %c0_61] : memref<1x1x16xf32, #tpu.memory_space<vmem>>, vector<1x1x16xf32>
    %103 = vector.broadcast %102 : vector<1x1x16xf32> to vector<2x16x16xf32>
    %104 = arith.addf %101, %103 : vector<2x16x16xf32>
    %cst_62 = arith.constant 0.000000e+00 : f32
    %105 = vector.broadcast %cst_62 : f32 to vector<2x16x16xf32>
    %106 = arith.maximumf %104, %105 : vector<2x16x16xf32>
    %107 = vector.extract_strided_slice %106 {offsets = [0, 14, 0], sizes = [2, 2, 16], strides = [1, 1, 1]} : vector<2x16x16xf32> to vector<2x2x16xf32>
    %108 = vector.extract_strided_slice %106 {offsets = [0, 0, 0], sizes = [2, 14, 16], strides = [1, 1, 1]} : vector<2x16x16xf32> to vector<2x14x16xf32>
    %109 = tpu.concatenate %107, %108 in 1 : vector<2x2x16xf32>, vector<2x14x16xf32> -> vector<2x16x16xf32>
    %110 = vector.shape_cast %109 : vector<2x16x16xf32> to vector<32x16xf32>
    %111 = arith.truncf %110 : vector<32x16xf32> to vector<32x16xbf16>
    %c0_63 = arith.constant 0 : index
    %c0_64 = arith.constant 0 : index
    %c0_65 = arith.constant 0 : index
    %112 = vector.load %arg16[%c0_63, %c0_64, %c0_65] : memref<3x16x8xbf16, #tpu.memory_space<vmem>>, vector<1x16x8xbf16>
    %113 = vector.shape_cast %112 : vector<1x16x8xbf16> to vector<16x8xbf16>
    %cst_66 = arith.constant dense<0.000000e+00> : vector<32x8xf32>
    %114 = tpu.matmul %111, %113, %cst_66 {dimension_numbers = #tpu.dot_dimension_numbers<[1], [0], [0], [1], [0, 0, 1, 1], [], []>} : vector<32x16xbf16>, vector<16x8xbf16>, vector<32x8xf32> -> vector<32x8xf32>
    %115 = vector.shape_cast %106 : vector<2x16x16xf32> to vector<32x16xf32>
    %116 = arith.truncf %115 : vector<32x16xf32> to vector<32x16xbf16>
    %c1_67 = arith.constant 1 : index
    %c0_68 = arith.constant 0 : index
    %c0_69 = arith.constant 0 : index
    %117 = vector.load %arg16[%c1_67, %c0_68, %c0_69] : memref<3x16x8xbf16, #tpu.memory_space<vmem>>, vector<1x16x8xbf16>
    %118 = vector.shape_cast %117 : vector<1x16x8xbf16> to vector<16x8xbf16>
    %cst_70 = arith.constant dense<0.000000e+00> : vector<32x8xf32>
    %119 = tpu.matmul %116, %118, %cst_70 {dimension_numbers = #tpu.dot_dimension_numbers<[1], [0], [0], [1], [0, 0, 1, 1], [], []>} : vector<32x16xbf16>, vector<16x8xbf16>, vector<32x8xf32> -> vector<32x8xf32>
    %120 = arith.addf %114, %119 : vector<32x8xf32>
    %121 = vector.extract_strided_slice %106 {offsets = [0, 2, 0], sizes = [2, 14, 16], strides = [1, 1, 1]} : vector<2x16x16xf32> to vector<2x14x16xf32>
    %122 = vector.extract_strided_slice %106 {offsets = [0, 0, 0], sizes = [2, 2, 16], strides = [1, 1, 1]} : vector<2x16x16xf32> to vector<2x2x16xf32>
    %123 = tpu.concatenate %121, %122 in 1 : vector<2x14x16xf32>, vector<2x2x16xf32> -> vector<2x16x16xf32>
    %124 = vector.shape_cast %123 : vector<2x16x16xf32> to vector<32x16xf32>
    %125 = arith.truncf %124 : vector<32x16xf32> to vector<32x16xbf16>
    %c2_71 = arith.constant 2 : index
    %c0_72 = arith.constant 0 : index
    %c0_73 = arith.constant 0 : index
    %126 = vector.load %arg16[%c2_71, %c0_72, %c0_73] : memref<3x16x8xbf16, #tpu.memory_space<vmem>>, vector<1x16x8xbf16>
    %127 = vector.shape_cast %126 : vector<1x16x8xbf16> to vector<16x8xbf16>
    %cst_74 = arith.constant dense<0.000000e+00> : vector<32x8xf32>
    %128 = tpu.matmul %125, %127, %cst_74 {dimension_numbers = #tpu.dot_dimension_numbers<[1], [0], [0], [1], [0, 0, 1, 1], [], []>} : vector<32x16xbf16>, vector<16x8xbf16>, vector<32x8xf32> -> vector<32x8xf32>
    %129 = arith.addf %120, %128 : vector<32x8xf32>
    %130 = vector.shape_cast %129 : vector<32x8xf32> to vector<2x16x8xf32>
    %c0_75 = arith.constant 0 : index
    %c0_76 = arith.constant 0 : index
    %c0_77 = arith.constant 0 : index
    %131 = vector.load %arg17[%c0_75, %c0_76, %c0_77] : memref<1x1x8xf32, #tpu.memory_space<vmem>>, vector<1x1x8xf32>
    %132 = vector.broadcast %131 : vector<1x1x8xf32> to vector<2x16x8xf32>
    %133 = arith.mulf %130, %132 : vector<2x16x8xf32>
    %c0_78 = arith.constant 0 : index
    %c0_79 = arith.constant 0 : index
    %c0_80 = arith.constant 0 : index
    %134 = vector.load %arg18[%c0_78, %c0_79, %c0_80] : memref<1x1x8xf32, #tpu.memory_space<vmem>>, vector<1x1x8xf32>
    %135 = vector.broadcast %134 : vector<1x1x8xf32> to vector<2x16x8xf32>
    %136 = arith.addf %133, %135 : vector<2x16x8xf32>
    %cst_81 = arith.constant 0.000000e+00 : f32
    %137 = vector.broadcast %cst_81 : f32 to vector<2x16x8xf32>
    %138 = arith.maximumf %136, %137 : vector<2x16x8xf32>
    %139 = arith.addf %138, %74 : vector<2x16x8xf32>
    %140 = vector.shape_cast %139 : vector<2x16x8xf32> to vector<1x2x16x8xf32>
    %141 = vector.extract_strided_slice %140 {offsets = [0, 0, 0, 0], sizes = [1, 1, 16, 8], strides = [1, 1, 1, 1]} : vector<1x2x16x8xf32> to vector<1x1x16x8xf32>
    %142 = vector.shape_cast %141 : vector<1x1x16x8xf32> to vector<1x16x8xf32>
    %143 = vector.extract_strided_slice %140 {offsets = [0, 1, 0, 0], sizes = [1, 1, 16, 8], strides = [1, 1, 1, 1]} : vector<1x2x16x8xf32> to vector<1x1x16x8xf32>
    %144 = vector.shape_cast %143 : vector<1x1x16x8xf32> to vector<1x16x8xf32>
    %145 = arith.subf %142, %144 : vector<1x16x8xf32>
    %146 = vector.extract_strided_slice %145 {offsets = [0, 15, 0], sizes = [1, 1, 8], strides = [1, 1, 1]} : vector<1x16x8xf32> to vector<1x1x8xf32>
    %147 = vector.extract_strided_slice %145 {offsets = [0, 0, 0], sizes = [1, 15, 8], strides = [1, 1, 1]} : vector<1x16x8xf32> to vector<1x15x8xf32>
    %148 = tpu.concatenate %146, %147 in 1 : vector<1x1x8xf32>, vector<1x15x8xf32> -> vector<1x16x8xf32>
    %149 = vector.shape_cast %148 : vector<1x16x8xf32> to vector<16x8xf32>
    %150 = arith.truncf %149 : vector<16x8xf32> to vector<16x8xbf16>
    %c0_82 = arith.constant 0 : index
    %c0_83 = arith.constant 0 : index
    %c0_84 = arith.constant 0 : index
    %151 = vector.load %arg19[%c0_82, %c0_83, %c0_84] : memref<3x8x32xbf16, #tpu.memory_space<vmem>>, vector<1x8x32xbf16>
    %152 = vector.shape_cast %151 : vector<1x8x32xbf16> to vector<8x32xbf16>
    %cst_85 = arith.constant dense<0.000000e+00> : vector<16x32xf32>
    %153 = tpu.matmul %150, %152, %cst_85 {dimension_numbers = #tpu.dot_dimension_numbers<[1], [0], [0], [1], [0, 0, 1, 1], [], []>} : vector<16x8xbf16>, vector<8x32xbf16>, vector<16x32xf32> -> vector<16x32xf32>
    %154 = vector.shape_cast %145 : vector<1x16x8xf32> to vector<16x8xf32>
    %155 = arith.truncf %154 : vector<16x8xf32> to vector<16x8xbf16>
    %c1_86 = arith.constant 1 : index
    %c0_87 = arith.constant 0 : index
    %c0_88 = arith.constant 0 : index
    %156 = vector.load %arg19[%c1_86, %c0_87, %c0_88] : memref<3x8x32xbf16, #tpu.memory_space<vmem>>, vector<1x8x32xbf16>
    %157 = vector.shape_cast %156 : vector<1x8x32xbf16> to vector<8x32xbf16>
    %cst_89 = arith.constant dense<0.000000e+00> : vector<16x32xf32>
    %158 = tpu.matmul %155, %157, %cst_89 {dimension_numbers = #tpu.dot_dimension_numbers<[1], [0], [0], [1], [0, 0, 1, 1], [], []>} : vector<16x8xbf16>, vector<8x32xbf16>, vector<16x32xf32> -> vector<16x32xf32>
    %159 = arith.addf %153, %158 : vector<16x32xf32>
    %160 = vector.extract_strided_slice %145 {offsets = [0, 1, 0], sizes = [1, 15, 8], strides = [1, 1, 1]} : vector<1x16x8xf32> to vector<1x15x8xf32>
    %161 = vector.extract_strided_slice %145 {offsets = [0, 0, 0], sizes = [1, 1, 8], strides = [1, 1, 1]} : vector<1x16x8xf32> to vector<1x1x8xf32>
    %162 = tpu.concatenate %160, %161 in 1 : vector<1x15x8xf32>, vector<1x1x8xf32> -> vector<1x16x8xf32>
    %163 = vector.shape_cast %162 : vector<1x16x8xf32> to vector<16x8xf32>
    %164 = arith.truncf %163 : vector<16x8xf32> to vector<16x8xbf16>
    %c2_90 = arith.constant 2 : index
    %c0_91 = arith.constant 0 : index
    %c0_92 = arith.constant 0 : index
    %165 = vector.load %arg19[%c2_90, %c0_91, %c0_92] : memref<3x8x32xbf16, #tpu.memory_space<vmem>>, vector<1x8x32xbf16>
    %166 = vector.shape_cast %165 : vector<1x8x32xbf16> to vector<8x32xbf16>
    %cst_93 = arith.constant dense<0.000000e+00> : vector<16x32xf32>
    %167 = tpu.matmul %164, %166, %cst_93 {dimension_numbers = #tpu.dot_dimension_numbers<[1], [0], [0], [1], [0, 0, 1, 1], [], []>} : vector<16x8xbf16>, vector<8x32xbf16>, vector<16x32xf32> -> vector<16x32xf32>
    %168 = arith.addf %159, %167 : vector<16x32xf32>
    %169 = vector.shape_cast %168 : vector<16x32xf32> to vector<1x16x32xf32>
    %c0_94 = arith.constant 0 : index
    %c0_95 = arith.constant 0 : index
    %c0_96 = arith.constant 0 : index
    %170 = vector.load %arg20[%c0_94, %c0_95, %c0_96] : memref<1x1x32xf32, #tpu.memory_space<vmem>>, vector<1x1x32xf32>
    %171 = vector.broadcast %170 : vector<1x1x32xf32> to vector<1x16x32xf32>
    %172 = arith.mulf %169, %171 : vector<1x16x32xf32>
    %c0_97 = arith.constant 0 : index
    %c0_98 = arith.constant 0 : index
    %c0_99 = arith.constant 0 : index
    %173 = vector.load %arg21[%c0_97, %c0_98, %c0_99] : memref<1x1x32xf32, #tpu.memory_space<vmem>>, vector<1x1x32xf32>
    %174 = vector.broadcast %173 : vector<1x1x32xf32> to vector<1x16x32xf32>
    %175 = arith.addf %172, %174 : vector<1x16x32xf32>
    %cst_100 = arith.constant 0.000000e+00 : f32
    %176 = vector.broadcast %cst_100 : f32 to vector<1x16x32xf32>
    %177 = arith.maximumf %175, %176 : vector<1x16x32xf32>
    %178 = vector.extract_strided_slice %177 {offsets = [0, 15, 0], sizes = [1, 1, 32], strides = [1, 1, 1]} : vector<1x16x32xf32> to vector<1x1x32xf32>
    %179 = vector.extract_strided_slice %177 {offsets = [0, 0, 0], sizes = [1, 15, 32], strides = [1, 1, 1]} : vector<1x16x32xf32> to vector<1x15x32xf32>
    %180 = tpu.concatenate %178, %179 in 1 : vector<1x1x32xf32>, vector<1x15x32xf32> -> vector<1x16x32xf32>
    %181 = vector.shape_cast %180 : vector<1x16x32xf32> to vector<16x32xf32>
    %182 = arith.truncf %181 : vector<16x32xf32> to vector<16x32xbf16>
    %c0_101 = arith.constant 0 : index
    %c0_102 = arith.constant 0 : index
    %c0_103 = arith.constant 0 : index
    %183 = vector.load %arg22[%c0_101, %c0_102, %c0_103] : memref<3x32x16xbf16, #tpu.memory_space<vmem>>, vector<1x32x16xbf16>
    %184 = vector.shape_cast %183 : vector<1x32x16xbf16> to vector<32x16xbf16>
    %cst_104 = arith.constant dense<0.000000e+00> : vector<16x16xf32>
    %185 = tpu.matmul %182, %184, %cst_104 {dimension_numbers = #tpu.dot_dimension_numbers<[1], [0], [0], [1], [0, 0, 1, 1], [], []>} : vector<16x32xbf16>, vector<32x16xbf16>, vector<16x16xf32> -> vector<16x16xf32>
    %186 = vector.shape_cast %177 : vector<1x16x32xf32> to vector<16x32xf32>
    %187 = arith.truncf %186 : vector<16x32xf32> to vector<16x32xbf16>
    %c1_105 = arith.constant 1 : index
    %c0_106 = arith.constant 0 : index
    %c0_107 = arith.constant 0 : index
    %188 = vector.load %arg22[%c1_105, %c0_106, %c0_107] : memref<3x32x16xbf16, #tpu.memory_space<vmem>>, vector<1x32x16xbf16>
    %189 = vector.shape_cast %188 : vector<1x32x16xbf16> to vector<32x16xbf16>
    %cst_108 = arith.constant dense<0.000000e+00> : vector<16x16xf32>
    %190 = tpu.matmul %187, %189, %cst_108 {dimension_numbers = #tpu.dot_dimension_numbers<[1], [0], [0], [1], [0, 0, 1, 1], [], []>} : vector<16x32xbf16>, vector<32x16xbf16>, vector<16x16xf32> -> vector<16x16xf32>
    %191 = arith.addf %185, %190 : vector<16x16xf32>
    %192 = vector.extract_strided_slice %177 {offsets = [0, 1, 0], sizes = [1, 15, 32], strides = [1, 1, 1]} : vector<1x16x32xf32> to vector<1x15x32xf32>
    %193 = vector.extract_strided_slice %177 {offsets = [0, 0, 0], sizes = [1, 1, 32], strides = [1, 1, 1]} : vector<1x16x32xf32> to vector<1x1x32xf32>
    %194 = tpu.concatenate %192, %193 in 1 : vector<1x15x32xf32>, vector<1x1x32xf32> -> vector<1x16x32xf32>
    %195 = vector.shape_cast %194 : vector<1x16x32xf32> to vector<16x32xf32>
    %196 = arith.truncf %195 : vector<16x32xf32> to vector<16x32xbf16>
    %c2_109 = arith.constant 2 : index
    %c0_110 = arith.constant 0 : index
    %c0_111 = arith.constant 0 : index
    %197 = vector.load %arg22[%c2_109, %c0_110, %c0_111] : memref<3x32x16xbf16, #tpu.memory_space<vmem>>, vector<1x32x16xbf16>
    %198 = vector.shape_cast %197 : vector<1x32x16xbf16> to vector<32x16xbf16>
    %cst_112 = arith.constant dense<0.000000e+00> : vector<16x16xf32>
    %199 = tpu.matmul %196, %198, %cst_112 {dimension_numbers = #tpu.dot_dimension_numbers<[1], [0], [0], [1], [0, 0, 1, 1], [], []>} : vector<16x32xbf16>, vector<32x16xbf16>, vector<16x16xf32> -> vector<16x16xf32>
    %200 = arith.addf %191, %199 : vector<16x16xf32>
    %201 = vector.shape_cast %200 : vector<16x16xf32> to vector<1x16x16xf32>
    %c0_113 = arith.constant 0 : index
    %c0_114 = arith.constant 0 : index
    %c0_115 = arith.constant 0 : index
    %202 = vector.load %arg23[%c0_113, %c0_114, %c0_115] : memref<1x1x16xf32, #tpu.memory_space<vmem>>, vector<1x1x16xf32>
    %203 = vector.broadcast %202 : vector<1x1x16xf32> to vector<1x16x16xf32>
    %204 = arith.mulf %201, %203 : vector<1x16x16xf32>
    %c0_116 = arith.constant 0 : index
    %c0_117 = arith.constant 0 : index
    %c0_118 = arith.constant 0 : index
    %205 = vector.load %arg24[%c0_116, %c0_117, %c0_118] : memref<1x1x16xf32, #tpu.memory_space<vmem>>, vector<1x1x16xf32>
    %206 = vector.broadcast %205 : vector<1x1x16xf32> to vector<1x16x16xf32>
    %207 = arith.addf %204, %206 : vector<1x16x16xf32>
    %cst_119 = arith.constant 0.000000e+00 : f32
    %208 = vector.broadcast %cst_119 : f32 to vector<1x16x16xf32>
    %209 = arith.maximumf %207, %208 : vector<1x16x16xf32>
    %210 = vector.shape_cast %145 : vector<1x16x8xf32> to vector<16x8xf32>
    %211 = arith.truncf %210 : vector<16x8xf32> to vector<16x8xbf16>
    %c0_120 = arith.constant 0 : index
    %c0_121 = arith.constant 0 : index
    %212 = vector.load %arg25[%c0_120, %c0_121] : memref<8x16xbf16, #tpu.memory_space<vmem>>, vector<8x16xbf16>
    %cst_122 = arith.constant dense<0.000000e+00> : vector<16x16xf32>
    %213 = tpu.matmul %211, %212, %cst_122 {dimension_numbers = #tpu.dot_dimension_numbers<[1], [0], [0], [1], [0, 0, 1, 1], [], []>} : vector<16x8xbf16>, vector<8x16xbf16>, vector<16x16xf32> -> vector<16x16xf32>
    %214 = vector.shape_cast %213 : vector<16x16xf32> to vector<1x16x16xf32>
    %c0_123 = arith.constant 0 : index
    %c0_124 = arith.constant 0 : index
    %c0_125 = arith.constant 0 : index
    %215 = vector.load %arg26[%c0_123, %c0_124, %c0_125] : memref<1x1x16xf32, #tpu.memory_space<vmem>>, vector<1x1x16xf32>
    %216 = vector.broadcast %215 : vector<1x1x16xf32> to vector<1x16x16xf32>
    %217 = arith.addf %214, %216 : vector<1x16x16xf32>
    %218 = arith.addf %209, %217 : vector<1x16x16xf32>
    %219 = vector.extract_strided_slice %218 {offsets = [0, 14, 0], sizes = [1, 2, 16], strides = [1, 1, 1]} : vector<1x16x16xf32> to vector<1x2x16xf32>
    %220 = vector.extract_strided_slice %218 {offsets = [0, 0, 0], sizes = [1, 14, 16], strides = [1, 1, 1]} : vector<1x16x16xf32> to vector<1x14x16xf32>
    %221 = tpu.concatenate %219, %220 in 1 : vector<1x2x16xf32>, vector<1x14x16xf32> -> vector<1x16x16xf32>
    %222 = vector.shape_cast %221 : vector<1x16x16xf32> to vector<16x16xf32>
    %223 = arith.truncf %222 : vector<16x16xf32> to vector<16x16xbf16>
    %c0_126 = arith.constant 0 : index
    %c0_127 = arith.constant 0 : index
    %c0_128 = arith.constant 0 : index
    %224 = vector.load %arg27[%c0_126, %c0_127, %c0_128] : memref<3x16x32xbf16, #tpu.memory_space<vmem>>, vector<1x16x32xbf16>
    %225 = vector.shape_cast %224 : vector<1x16x32xbf16> to vector<16x32xbf16>
    %cst_129 = arith.constant dense<0.000000e+00> : vector<16x32xf32>
    %226 = tpu.matmul %223, %225, %cst_129 {dimension_numbers = #tpu.dot_dimension_numbers<[1], [0], [0], [1], [0, 0, 1, 1], [], []>} : vector<16x16xbf16>, vector<16x32xbf16>, vector<16x32xf32> -> vector<16x32xf32>
    %227 = vector.shape_cast %218 : vector<1x16x16xf32> to vector<16x16xf32>
    %228 = arith.truncf %227 : vector<16x16xf32> to vector<16x16xbf16>
    %c1_130 = arith.constant 1 : index
    %c0_131 = arith.constant 0 : index
    %c0_132 = arith.constant 0 : index
    %229 = vector.load %arg27[%c1_130, %c0_131, %c0_132] : memref<3x16x32xbf16, #tpu.memory_space<vmem>>, vector<1x16x32xbf16>
    %230 = vector.shape_cast %229 : vector<1x16x32xbf16> to vector<16x32xbf16>
    %cst_133 = arith.constant dense<0.000000e+00> : vector<16x32xf32>
    %231 = tpu.matmul %228, %230, %cst_133 {dimension_numbers = #tpu.dot_dimension_numbers<[1], [0], [0], [1], [0, 0, 1, 1], [], []>} : vector<16x16xbf16>, vector<16x32xbf16>, vector<16x32xf32> -> vector<16x32xf32>
    %232 = arith.addf %226, %231 : vector<16x32xf32>
    %233 = vector.extract_strided_slice %218 {offsets = [0, 2, 0], sizes = [1, 14, 16], strides = [1, 1, 1]} : vector<1x16x16xf32> to vector<1x14x16xf32>
    %234 = vector.extract_strided_slice %218 {offsets = [0, 0, 0], sizes = [1, 2, 16], strides = [1, 1, 1]} : vector<1x16x16xf32> to vector<1x2x16xf32>
    %235 = tpu.concatenate %233, %234 in 1 : vector<1x14x16xf32>, vector<1x2x16xf32> -> vector<1x16x16xf32>
    %236 = vector.shape_cast %235 : vector<1x16x16xf32> to vector<16x16xf32>
    %237 = arith.truncf %236 : vector<16x16xf32> to vector<16x16xbf16>
    %c2_134 = arith.constant 2 : index
    %c0_135 = arith.constant 0 : index
    %c0_136 = arith.constant 0 : index
    %238 = vector.load %arg27[%c2_134, %c0_135, %c0_136] : memref<3x16x32xbf16, #tpu.memory_space<vmem>>, vector<1x16x32xbf16>
    %239 = vector.shape_cast %238 : vector<1x16x32xbf16> to vector<16x32xbf16>
    %cst_137 = arith.constant dense<0.000000e+00> : vector<16x32xf32>
    %240 = tpu.matmul %237, %239, %cst_137 {dimension_numbers = #tpu.dot_dimension_numbers<[1], [0], [0], [1], [0, 0, 1, 1], [], []>} : vector<16x16xbf16>, vector<16x32xbf16>, vector<16x32xf32> -> vector<16x32xf32>
    %241 = arith.addf %232, %240 : vector<16x32xf32>
    %242 = vector.shape_cast %241 : vector<16x32xf32> to vector<1x16x32xf32>
    %c0_138 = arith.constant 0 : index
    %c0_139 = arith.constant 0 : index
    %c0_140 = arith.constant 0 : index
    %243 = vector.load %arg28[%c0_138, %c0_139, %c0_140] : memref<1x1x32xf32, #tpu.memory_space<vmem>>, vector<1x1x32xf32>
    %244 = vector.broadcast %243 : vector<1x1x32xf32> to vector<1x16x32xf32>
    %245 = arith.mulf %242, %244 : vector<1x16x32xf32>
    %c0_141 = arith.constant 0 : index
    %c0_142 = arith.constant 0 : index
    %c0_143 = arith.constant 0 : index
    %246 = vector.load %arg29[%c0_141, %c0_142, %c0_143] : memref<1x1x32xf32, #tpu.memory_space<vmem>>, vector<1x1x32xf32>
    %247 = vector.broadcast %246 : vector<1x1x32xf32> to vector<1x16x32xf32>
    %248 = arith.addf %245, %247 : vector<1x16x32xf32>
    %cst_144 = arith.constant 0.000000e+00 : f32
    %249 = vector.broadcast %cst_144 : f32 to vector<1x16x32xf32>
    %250 = arith.maximumf %248, %249 : vector<1x16x32xf32>
    %251 = vector.extract_strided_slice %250 {offsets = [0, 14, 0], sizes = [1, 2, 32], strides = [1, 1, 1]} : vector<1x16x32xf32> to vector<1x2x32xf32>
    %252 = vector.extract_strided_slice %250 {offsets = [0, 0, 0], sizes = [1, 14, 32], strides = [1, 1, 1]} : vector<1x16x32xf32> to vector<1x14x32xf32>
    %253 = tpu.concatenate %251, %252 in 1 : vector<1x2x32xf32>, vector<1x14x32xf32> -> vector<1x16x32xf32>
    %254 = vector.shape_cast %253 : vector<1x16x32xf32> to vector<16x32xf32>
    %255 = arith.truncf %254 : vector<16x32xf32> to vector<16x32xbf16>
    %c0_145 = arith.constant 0 : index
    %c0_146 = arith.constant 0 : index
    %c0_147 = arith.constant 0 : index
    %256 = vector.load %arg30[%c0_145, %c0_146, %c0_147] : memref<3x32x16xbf16, #tpu.memory_space<vmem>>, vector<1x32x16xbf16>
    %257 = vector.shape_cast %256 : vector<1x32x16xbf16> to vector<32x16xbf16>
    %cst_148 = arith.constant dense<0.000000e+00> : vector<16x16xf32>
    %258 = tpu.matmul %255, %257, %cst_148 {dimension_numbers = #tpu.dot_dimension_numbers<[1], [0], [0], [1], [0, 0, 1, 1], [], []>} : vector<16x32xbf16>, vector<32x16xbf16>, vector<16x16xf32> -> vector<16x16xf32>
    %259 = vector.shape_cast %250 : vector<1x16x32xf32> to vector<16x32xf32>
    %260 = arith.truncf %259 : vector<16x32xf32> to vector<16x32xbf16>
    %c1_149 = arith.constant 1 : index
    %c0_150 = arith.constant 0 : index
    %c0_151 = arith.constant 0 : index
    %261 = vector.load %arg30[%c1_149, %c0_150, %c0_151] : memref<3x32x16xbf16, #tpu.memory_space<vmem>>, vector<1x32x16xbf16>
    %262 = vector.shape_cast %261 : vector<1x32x16xbf16> to vector<32x16xbf16>
    %cst_152 = arith.constant dense<0.000000e+00> : vector<16x16xf32>
    %263 = tpu.matmul %260, %262, %cst_152 {dimension_numbers = #tpu.dot_dimension_numbers<[1], [0], [0], [1], [0, 0, 1, 1], [], []>} : vector<16x32xbf16>, vector<32x16xbf16>, vector<16x16xf32> -> vector<16x16xf32>
    %264 = arith.addf %258, %263 : vector<16x16xf32>
    %265 = vector.extract_strided_slice %250 {offsets = [0, 2, 0], sizes = [1, 14, 32], strides = [1, 1, 1]} : vector<1x16x32xf32> to vector<1x14x32xf32>
    %266 = vector.extract_strided_slice %250 {offsets = [0, 0, 0], sizes = [1, 2, 32], strides = [1, 1, 1]} : vector<1x16x32xf32> to vector<1x2x32xf32>
    %267 = tpu.concatenate %265, %266 in 1 : vector<1x14x32xf32>, vector<1x2x32xf32> -> vector<1x16x32xf32>
    %268 = vector.shape_cast %267 : vector<1x16x32xf32> to vector<16x32xf32>
    %269 = arith.truncf %268 : vector<16x32xf32> to vector<16x32xbf16>
    %c2_153 = arith.constant 2 : index
    %c0_154 = arith.constant 0 : index
    %c0_155 = arith.constant 0 : index
    %270 = vector.load %arg30[%c2_153, %c0_154, %c0_155] : memref<3x32x16xbf16, #tpu.memory_space<vmem>>, vector<1x32x16xbf16>
    %271 = vector.shape_cast %270 : vector<1x32x16xbf16> to vector<32x16xbf16>
    %cst_156 = arith.constant dense<0.000000e+00> : vector<16x16xf32>
    %272 = tpu.matmul %269, %271, %cst_156 {dimension_numbers = #tpu.dot_dimension_numbers<[1], [0], [0], [1], [0, 0, 1, 1], [], []>} : vector<16x32xbf16>, vector<32x16xbf16>, vector<16x16xf32> -> vector<16x16xf32>
    %273 = arith.addf %264, %272 : vector<16x16xf32>
    %274 = vector.shape_cast %273 : vector<16x16xf32> to vector<1x16x16xf32>
    %c0_157 = arith.constant 0 : index
    %c0_158 = arith.constant 0 : index
    %c0_159 = arith.constant 0 : index
    %275 = vector.load %arg31[%c0_157, %c0_158, %c0_159] : memref<1x1x16xf32, #tpu.memory_space<vmem>>, vector<1x1x16xf32>
    %276 = vector.broadcast %275 : vector<1x1x16xf32> to vector<1x16x16xf32>
    %277 = arith.mulf %274, %276 : vector<1x16x16xf32>
    %c0_160 = arith.constant 0 : index
    %c0_161 = arith.constant 0 : index
    %c0_162 = arith.constant 0 : index
    %278 = vector.load %arg32[%c0_160, %c0_161, %c0_162] : memref<1x1x16xf32, #tpu.memory_space<vmem>>, vector<1x1x16xf32>
    %279 = vector.broadcast %278 : vector<1x1x16xf32> to vector<1x16x16xf32>
    %280 = arith.addf %277, %279 : vector<1x16x16xf32>
    %cst_163 = arith.constant 0.000000e+00 : f32
    %281 = vector.broadcast %cst_163 : f32 to vector<1x16x16xf32>
    %282 = arith.maximumf %280, %281 : vector<1x16x16xf32>
    %283 = arith.addf %282, %218 : vector<1x16x16xf32>
    %cst_164 = arith.constant dense<0.000000e+00> : vector<1x16xf32>
    %284 = vector.multi_reduction <add>, %283, %cst_164 [1] : vector<1x16x16xf32> to vector<1x16xf32>
    %cst_165 = arith.constant 1.600000e+01 : f32
    %285 = vector.broadcast %cst_165 : f32 to vector<1x16xf32>
    %286 = arith.divf %284, %285 : vector<1x16xf32>
    %287 = arith.truncf %286 : vector<1x16xf32> to vector<1x16xbf16>
    %c0_166 = arith.constant 0 : index
    %c0_167 = arith.constant 0 : index
    %288 = vector.load %arg3[%c0_166, %c0_167] : memref<16x10xbf16, #tpu.memory_space<vmem>>, vector<16x10xbf16>
    %cst_168 = arith.constant dense<0.000000e+00> : vector<1x10xf32>
    %289 = tpu.matmul %287, %288, %cst_168 {dimension_numbers = #tpu.dot_dimension_numbers<[1], [0], [0], [1], [0, 0, 1, 1], [], []>} : vector<1x16xbf16>, vector<16x10xbf16>, vector<1x10xf32> -> vector<1x10xf32>
    %c0_169 = arith.constant 0 : index
    %c0_170 = arith.constant 0 : index
    %290 = vector.load %arg4[%c0_169, %c0_170] : memref<1x10xf32, #tpu.memory_space<vmem>>, vector<1x10xf32>
    %291 = arith.addf %289, %290 : vector<1x10xf32>
    %292 = tpu.iota {dimensions = array<i32: 1>} : vector<1x10xi32>
    %c0_171 = arith.constant 0 : index
    %c0_172 = arith.constant 0 : index
    %c0_173 = arith.constant 0 : index
    %293 = vector.load %arg2[%c0_171, %c0_172, %c0_173] : memref<1x1x1xi32, #tpu.memory_space<vmem>>, vector<1x1x1xi32>
    %294 = vector.shape_cast %293 : vector<1x1x1xi32> to vector<1x1xi32>
    %295 = vector.broadcast %294 : vector<1x1xi32> to vector<1x10xi32>
    %296 = arith.cmpi eq, %292, %295 : vector<1x10xi32>
    %cst_174 = arith.constant 0.000000e+00 : f32
    %297 = vector.broadcast %cst_174 : f32 to vector<1x10xf32>
    %298 = arith.select %296, %291, %297 : vector<1x10xi1>, vector<1x10xf32>
    %cst_175 = arith.constant dense<0.000000e+00> : vector<1xf32>
    %299 = vector.multi_reduction <add>, %298, %cst_175 [1] : vector<1x10xf32> to vector<1xf32>
    %300 = vector.shape_cast %299 : vector<1xf32> to vector<1x1xf32>
    %301 = vector.shape_cast %300 : vector<1x1xf32> to vector<1x1x1xf32>
    %c0_176 = arith.constant 0 : index
    %c0_177 = arith.constant 0 : index
    %c0_178 = arith.constant 0 : index
    %302 = vector.load %arg33[%c0_176, %c0_177, %c0_178] : memref<1x1x1xf32, #tpu.memory_space<vmem>>, vector<1x1x1xf32>
    tpu.vector_store %arg33[%c0_176, %c0_177, %c0_178], %301 {strides = array<i32>} : memref<1x1x1xf32, #tpu.memory_space<vmem>>, vector<1x1x1xf32>,
    return
  }
  func.func @transform_0(%arg0: i32) -> (i32, i32, i32, i32) {
    %c0_i32 = arith.constant 0 : i32
    %c0_i32_0 = arith.constant 0 : i32
    %c0_i32_1 = arith.constant 0 : i32
    %c0_i32_2 = arith.constant 0 : i32
    return %arg0, %c0_i32, %c0_i32_0, %c0_i32_1 : i32, i32, i32, i32
  }
  func.func @transform_1(%arg0: i32) -> (i32, i32, i32) {
    %c0_i32 = arith.constant 0 : i32
    %c0_i32_0 = arith.constant 0 : i32
    %c0_i32_1 = arith.constant 0 : i32
    return %arg0, %c0_i32, %c0_i32_0 : i32, i32, i32
  }
  func.func @transform_2(%arg0: i32) -> (i32, i32) {
    %c0_i32 = arith.constant 0 : i32
    %c0_i32_0 = arith.constant 0 : i32
    %c0_i32_1 = arith.constant 0 : i32
    return %c0_i32, %c0_i32_0 : i32, i32
  }
  func.func @transform_3(%arg0: i32) -> (i32, i32) {
    %c0_i32 = arith.constant 0 : i32
    %c0_i32_0 = arith.constant 0 : i32
    %c0_i32_1 = arith.constant 0 : i32
    return %c0_i32, %c0_i32_0 : i32, i32
  }
  func.func @transform_4(%arg0: i32) -> (i32, i32, i32) {
    %c0_i32 = arith.constant 0 : i32
    %c0_i32_0 = arith.constant 0 : i32
    %c0_i32_1 = arith.constant 0 : i32
    %c0_i32_2 = arith.constant 0 : i32
    return %c0_i32, %c0_i32_0, %c0_i32_1 : i32, i32, i32
  }
  func.func @transform_5(%arg0: i32) -> (i32, i32, i32) {
    %c0_i32 = arith.constant 0 : i32
    %c0_i32_0 = arith.constant 0 : i32
    %c0_i32_1 = arith.constant 0 : i32
    %c0_i32_2 = arith.constant 0 : i32
    return %c0_i32, %c0_i32_0, %c0_i32_1 : i32, i32, i32
  }
  func.func @transform_6(%arg0: i32) -> (i32, i32, i32) {
    %c0_i32 = arith.constant 0 : i32
    %c0_i32_0 = arith.constant 0 : i32
    %c0_i32_1 = arith.constant 0 : i32
    %c0_i32_2 = arith.constant 0 : i32
    return %c0_i32, %c0_i32_0, %c0_i32_1 : i32, i32, i32
  }
  func.func @transform_7(%arg0: i32) -> (i32, i32, i32) {
    %c0_i32 = arith.constant 0 : i32
    %c0_i32_0 = arith.constant 0 : i32
    %c0_i32_1 = arith.constant 0 : i32
    %c0_i32_2 = arith.constant 0 : i32
    return %c0_i32, %c0_i32_0, %c0_i32_1 : i32, i32, i32
  }
  func.func @transform_8(%arg0: i32) -> (i32, i32, i32) {
    %c0_i32 = arith.constant 0 : i32
    %c0_i32_0 = arith.constant 0 : i32
    %c0_i32_1 = arith.constant 0 : i32
    %c0_i32_2 = arith.constant 0 : i32
    return %c0_i32, %c0_i32_0, %c0_i32_1 : i32, i32, i32
  }
  func.func @transform_9(%arg0: i32) -> (i32, i32, i32) {
    %c0_i32 = arith.constant 0 : i32
    %c0_i32_0 = arith.constant 0 : i32
    %c0_i32_1 = arith.constant 0 : i32
    %c0_i32_2 = arith.constant 0 : i32
    return %c0_i32, %c0_i32_0, %c0_i32_1 : i32, i32, i32
  }
  func.func @transform_10(%arg0: i32) -> (i32, i32) {
    %c0_i32 = arith.constant 0 : i32
    %c0_i32_0 = arith.constant 0 : i32
    %c0_i32_1 = arith.constant 0 : i32
    return %c0_i32, %c0_i32_0 : i32, i32
  }
  func.func @transform_11(%arg0: i32) -> (i32, i32, i32) {
    %c0_i32 = arith.constant 0 : i32
    %c0_i32_0 = arith.constant 0 : i32
    %c0_i32_1 = arith.constant 0 : i32
    %c0_i32_2 = arith.constant 0 : i32
    return %c0_i32, %c0_i32_0, %c0_i32_1 : i32, i32, i32
  }
  func.func @transform_12(%arg0: i32) -> (i32, i32, i32) {
    %c0_i32 = arith.constant 0 : i32
    %c0_i32_0 = arith.constant 0 : i32
    %c0_i32_1 = arith.constant 0 : i32
    %c0_i32_2 = arith.constant 0 : i32
    return %c0_i32, %c0_i32_0, %c0_i32_1 : i32, i32, i32
  }
  func.func @transform_13(%arg0: i32) -> (i32, i32, i32) {
    %c0_i32 = arith.constant 0 : i32
    %c0_i32_0 = arith.constant 0 : i32
    %c0_i32_1 = arith.constant 0 : i32
    %c0_i32_2 = arith.constant 0 : i32
    return %c0_i32, %c0_i32_0, %c0_i32_1 : i32, i32, i32
  }
  func.func @transform_14(%arg0: i32) -> (i32, i32, i32) {
    %c0_i32 = arith.constant 0 : i32
    %c0_i32_0 = arith.constant 0 : i32
    %c0_i32_1 = arith.constant 0 : i32
    %c0_i32_2 = arith.constant 0 : i32
    return %c0_i32, %c0_i32_0, %c0_i32_1 : i32, i32, i32
  }
  func.func @transform_15(%arg0: i32) -> (i32, i32, i32) {
    %c0_i32 = arith.constant 0 : i32
    %c0_i32_0 = arith.constant 0 : i32
    %c0_i32_1 = arith.constant 0 : i32
    %c0_i32_2 = arith.constant 0 : i32
    return %c0_i32, %c0_i32_0, %c0_i32_1 : i32, i32, i32
  }
  func.func @transform_16(%arg0: i32) -> (i32, i32, i32) {
    %c0_i32 = arith.constant 0 : i32
    %c0_i32_0 = arith.constant 0 : i32
    %c0_i32_1 = arith.constant 0 : i32
    %c0_i32_2 = arith.constant 0 : i32
    return %c0_i32, %c0_i32_0, %c0_i32_1 : i32, i32, i32
  }
  func.func @transform_17(%arg0: i32) -> (i32, i32, i32) {
    %c0_i32 = arith.constant 0 : i32
    %c0_i32_0 = arith.constant 0 : i32
    %c0_i32_1 = arith.constant 0 : i32
    %c0_i32_2 = arith.constant 0 : i32
    return %c0_i32, %c0_i32_0, %c0_i32_1 : i32, i32, i32
  }
  func.func @transform_18(%arg0: i32) -> (i32, i32, i32) {
    %c0_i32 = arith.constant 0 : i32
    %c0_i32_0 = arith.constant 0 : i32
    %c0_i32_1 = arith.constant 0 : i32
    %c0_i32_2 = arith.constant 0 : i32
    return %c0_i32, %c0_i32_0, %c0_i32_1 : i32, i32, i32
  }
  func.func @transform_19(%arg0: i32) -> (i32, i32, i32) {
    %c0_i32 = arith.constant 0 : i32
    %c0_i32_0 = arith.constant 0 : i32
    %c0_i32_1 = arith.constant 0 : i32
    %c0_i32_2 = arith.constant 0 : i32
    return %c0_i32, %c0_i32_0, %c0_i32_1 : i32, i32, i32
  }
  func.func @transform_20(%arg0: i32) -> (i32, i32, i32) {
    %c0_i32 = arith.constant 0 : i32
    %c0_i32_0 = arith.constant 0 : i32
    %c0_i32_1 = arith.constant 0 : i32
    %c0_i32_2 = arith.constant 0 : i32
    return %c0_i32, %c0_i32_0, %c0_i32_1 : i32, i32, i32
  }
  func.func @transform_21(%arg0: i32) -> (i32, i32, i32) {
    %c0_i32 = arith.constant 0 : i32
    %c0_i32_0 = arith.constant 0 : i32
    %c0_i32_1 = arith.constant 0 : i32
    %c0_i32_2 = arith.constant 0 : i32
    return %c0_i32, %c0_i32_0, %c0_i32_1 : i32, i32, i32
  }
  func.func @transform_22(%arg0: i32) -> (i32, i32, i32) {
    %c0_i32 = arith.constant 0 : i32
    %c0_i32_0 = arith.constant 0 : i32
    %c0_i32_1 = arith.constant 0 : i32
    %c0_i32_2 = arith.constant 0 : i32
    return %c0_i32, %c0_i32_0, %c0_i32_1 : i32, i32, i32
  }
  func.func @transform_23(%arg0: i32) -> (i32, i32, i32) {
    %c0_i32 = arith.constant 0 : i32
    %c0_i32_0 = arith.constant 0 : i32
    %c0_i32_1 = arith.constant 0 : i32
    %c0_i32_2 = arith.constant 0 : i32
    return %c0_i32, %c0_i32_0, %c0_i32_1 : i32, i32, i32
  }
  func.func @transform_24(%arg0: i32) -> (i32, i32) {
    %c0_i32 = arith.constant 0 : i32
    %c0_i32_0 = arith.constant 0 : i32
    %c0_i32_1 = arith.constant 0 : i32
    return %c0_i32, %c0_i32_0 : i32, i32
  }
  func.func @transform_25(%arg0: i32) -> (i32, i32, i32) {
    %c0_i32 = arith.constant 0 : i32
    %c0_i32_0 = arith.constant 0 : i32
    %c0_i32_1 = arith.constant 0 : i32
    %c0_i32_2 = arith.constant 0 : i32
    return %c0_i32, %c0_i32_0, %c0_i32_1 : i32, i32, i32
  }
  func.func @transform_26(%arg0: i32) -> (i32, i32, i32) {
    %c0_i32 = arith.constant 0 : i32
    %c0_i32_0 = arith.constant 0 : i32
    %c0_i32_1 = arith.constant 0 : i32
    %c0_i32_2 = arith.constant 0 : i32
    return %c0_i32, %c0_i32_0, %c0_i32_1 : i32, i32, i32
  }
  func.func @transform_27(%arg0: i32) -> (i32, i32, i32) {
    %c0_i32 = arith.constant 0 : i32
    %c0_i32_0 = arith.constant 0 : i32
    %c0_i32_1 = arith.constant 0 : i32
    %c0_i32_2 = arith.constant 0 : i32
    return %c0_i32, %c0_i32_0, %c0_i32_1 : i32, i32, i32
  }
  func.func @transform_28(%arg0: i32) -> (i32, i32, i32) {
    %c0_i32 = arith.constant 0 : i32
    %c0_i32_0 = arith.constant 0 : i32
    %c0_i32_1 = arith.constant 0 : i32
    %c0_i32_2 = arith.constant 0 : i32
    return %c0_i32, %c0_i32_0, %c0_i32_1 : i32, i32, i32
  }
  func.func @transform_29(%arg0: i32) -> (i32, i32, i32) {
    %c0_i32 = arith.constant 0 : i32
    %c0_i32_0 = arith.constant 0 : i32
    %c0_i32_1 = arith.constant 0 : i32
    %c0_i32_2 = arith.constant 0 : i32
    return %c0_i32, %c0_i32_0, %c0_i32_1 : i32, i32, i32
  }
  func.func @transform_30(%arg0: i32) -> (i32, i32, i32) {
    %c0_i32 = arith.constant 0 : i32
    %c0_i32_0 = arith.constant 0 : i32
    %c0_i32_1 = arith.constant 0 : i32
    %c0_i32_2 = arith.constant 0 : i32
    return %c0_i32, %c0_i32_0, %c0_i32_1 : i32, i32, i32
  }
  func.func @transform_31(%arg0: i32) -> (i32, i32, i32) {
    %c0_i32 = arith.constant 0 : i32
    %c0_i32_0 = arith.constant 0 : i32
    %c0_i32_1 = arith.constant 0 : i32
    %c0_i32_2 = arith.constant 0 : i32
    return %c0_i32, %c0_i32_0, %c0_i32_1 : i32, i32, i32
  }
  func.func @transform_32(%arg0: i32) -> (i32, i32, i32) {
    %c0_i32 = arith.constant 0 : i32
    %c0_i32_0 = arith.constant 0 : i32
    %c0_i32_1 = arith.constant 0 : i32
    return %arg0, %c0_i32, %c0_i32_0 : i32, i32, i32
  }
}

</mosaic_0001>

<bundles_post_ra>
// kernel: tpu_custom_call.1
= control target key start
LH: loop header
LB: loop body
LE: loop exit
PB: predicated region body
PF: predicated region fallthrough
CT: control target
= control target key end

     0   :  { %s3673_s6 = smov 1   ;;  %s3674_s10 = smov 2   ;;  %s4141_s0 = inlined_call_operand.smem [shape: u32[33], index: -1, kind: input, shape index: {}] }
   0x1   :  { %s3716_s5 = sld [smem:[%s4141_s0]]   ;;  %s3675_s14 = smov 3  }
   0x2   :  { %s3721_s9 = sld [smem:[%s4141_s0 + %s3673_s6]]   ;;  %s3676_s18 = smov 4  }
   0x3   :  { %s3726_s13 = sld [smem:[%s4141_s0 + %s3674_s10]]   ;;  %s3677_s22 = smov 5  }
   0x4   :  { %s3731_s17 = sld [smem:[%s4141_s0 + %s3675_s14]]   ;;  %s3678_s26 = smov 6  }
   0x5   :  { %s3736_s21 = sld [smem:[%s4141_s0 + %s3676_s18]]   ;;  %s3679_s30 = smov 7  }
   0x6   :  { %s3741_s25 = sld [smem:[%s4141_s0 + %s3677_s22]]   ;;  %s3680_s4 = smov 8  }
   0x7   :  { %s3746_s29 = sld [smem:[%s4141_s0 + %s3678_s26]]   ;;  %s3681_s10 = smov 9  }
   0x8   :  { %4144 = sst [smem:[#allocation2_spill]] %s3721_s9  ;;  %s3682_s15 = smov 10  }
   0x9   :  { %4145 = sst [smem:[#allocation3_spill]] %s3726_s13  ;;  %s3683_s20 = smov 11  }
   0xa   :  { %4146 = sst [smem:[#allocation4_spill]] %s3731_s17  ;;  %s3684_s26 = smov 12  }
   0xb   :  { %s3751_s3 = sld [smem:[%s4141_s0 + %s3679_s30]]   ;;  %s3685_s1 = smov 13  }
   0xc   :  { %s3756_s8 = sld [smem:[%s4141_s0 + %s3680_s4]]   ;;  %s3686_s7 = smov 14  }
   0xd   :  { %s3761_s14 = sld [smem:[%s4141_s0 + %s3681_s10]]   ;;  %s3688_s22 = smov 16  }
   0xe   :  { %s3766_s19 = sld [smem:[%s4141_s0 + %s3682_s15]]   ;;  %s3687_s15 = smov 15  }
   0xf   :  { %s3771_s24 = sld [smem:[%s4141_s0 + %s3683_s20]]   ;;  %s3689_s28 = smov 17  }
  0x10   :  { %s3776_s30 = sld [smem:[%s4141_s0 + %s3684_s26]]  }
  0x11   :  { %s3781_s6 = sld [smem:[%s4141_s0 + %s3685_s1]]  }
  0x12   :  { %s3786_s12 = sld [smem:[%s4141_s0 + %s3686_s7]]   ;;  %s3690_s7 = smov 18  }
  0x13   :  { %s3791_s20 = sld [smem:[%s4141_s0 + %s3687_s15]]   ;;  %s3691_s15 = smov 19  }
  0x14   :  { %s3796_s27 = sld [smem:[%s4141_s0 + %s3688_s22]]   ;;  %s3692_s22 = smov 20  }
  0x15   :  { %s3801_s4 = sld [smem:[%s4141_s0 + %s3689_s28]]   ;;  %s3693_s28 = smov 21  }
  0x16   :  { %s3806_s17 = sld [smem:[%s4141_s0 + %s3690_s7]]   ;;  %s3694_s7 = smov 22  }
  0x17   :  { %s3811_s9 = sld [smem:[%s4141_s0 + %s3691_s15]]   ;;  %s3695_s15 = smov 23  }
  0x18   :  { %s3816_s13 = sld [smem:[%s4141_s0 + %s3692_s22]]   ;;  %s3696_s22 = smov 24  }
  0x1a   :  { %4147 = sst [smem:[#allocation5_spill]] %s3796_s27 }
  0x1b   :  { %4148 = sst [smem:[#allocation6_spill]] %s3801_s4 }
  0x1c   :  { %s3821_s4 = sld [smem:[%s4141_s0 + %s3693_s28]]   ;;  %s3697_s28 = smov 25  }
  0x1d   :  { %4149 = sst [smem:[#allocation7_spill]] %s3811_s9 }
  0x1e   :  { %4150 = sst [smem:[#allocation8_spill]] %s3816_s13 }
  0x1f   :  { %s3826_s27 = sld [smem:[%s4141_s0 + %s3694_s7]]   ;;  %s3698_s7 = smov 26  }
  0x20   :  { %s3831_s9 = sld [smem:[%s4141_s0 + %s3695_s15]]   ;;  %s3699_s15 = smov 27  }
  0x21   :  { %s3836_s13 = sld [smem:[%s4141_s0 + %s3696_s22]]   ;;  %s3700_s22 = smov 28  }
  0x22   :  { %4151 = sst [smem:[#allocation9_spill]] %s3821_s4 }
  0x23   :  { %s3841_s4 = sld [smem:[%s4141_s0 + %s3697_s28]]   ;;  %s3701_s28 = smov 29  }
  0x25   :  { %4152 = sst [smem:[#allocation10_spill]] %s3826_s27 }
  0x26   :  { %4153 = sst [smem:[#allocation11_spill]] %s3831_s9 }
  0x27   :  { %4154 = sst [smem:[#allocation12_spill]] %s3836_s13 }
  0x28   :  { %s3846_s27 = sld [smem:[%s4141_s0 + %s3698_s7]]   ;;  %s3702_s7 = smov 30  }
  0x29   :  { %4155 = sst [smem:[#allocation13_spill]] %s3841_s4 }
  0x2a   :  { %s3851_s9 = sld [smem:[%s4141_s0 + %s3699_s15]]   ;;  %s3703_s15 = smov 31  }
  0x2b   :  { %s3856_s13 = sld [smem:[%s4141_s0 + %s3700_s22]]   ;;  %s3704_s22 = smov 32  }
  0x2c   :  { %s3861_s4 = sld [smem:[%s4141_s0 + %s3701_s28]]   ;;  %s3878_s28 = smov 0  }
  0x2e   :  { %4156 = sst [smem:[#allocation14_spill]] %s3846_s27 }
  0x2f   :  { %s3866_s27 = sld [smem:[%s4141_s0 + %s3702_s7]]  }
  0x30   :  { %4157 = sst [smem:[#allocation15_spill]] %s3851_s9 }
  0x31   :  { %4158 = sst [smem:[#allocation16_spill]] %s3856_s13 }
  0x32   :  { %s3871_s9 = sld [smem:[%s4141_s0 + %s3703_s15]]  }
  0x33   :  { %s3876_s13 = sld [smem:[%s4141_s0 + %s3704_s22]]  }
  0x34 LB: > { %s3157_s1 = sadd.s32 4294967295, %s3671_s28   ;;  %p3161_p0 = scmp.ge.s32.totalorder %s3671_s28, 1  ;;  %s3671_s28 = sphi %s3878_s28, %s75_s28  }
  0x35   : > { %p903_p1 = scmp.lt.s32.totalorder %s3671_s28, 3 }
  0x37   : > { %p904_p2 = pnand %p3161_p0, %p903_p1 }
  0x38   : > { %v3164_v0 = vld [vmem:[%s3736_s21 + $0x2] sm:$0x3] (!%p904_p2)  ;;  %vm1035_vm0 = vcmask (!%p904_p2), 1041408   ;;  %p986_p3 = scmp.lt.s32.totalorder (!%p904_p2), %s3157_s1, 1  ;;  %v1023_v2 = vld [vmem:[%s3736_s21] sm:$0x3] (!%p904_p2) }
  0x39   : > { %907 = sbr.rel (%p904_p2) target bundleno = 2432 (0x980), region = 148  ;;  %3592 = vmatprep.subr.msk.bf16.mxu0 (!%p904_p2), %vm1035_vm0, %v3164_v0  ;;  %v1037_v1 = vsel (!%p904_p2), %vm1035_vm0, %v3164_v0, 0  ;;  %vm1028_vm1 = vcmask (!%p904_p2), 31744   ;;  %vm1010_vm2 = vcmask (!%p904_p2), 1040384   ;;  %v3169_v10 = vld [vmem:[%s3736_s21 + $0x4] sm:$0x3] (!%p904_p2) }
  0x3a   : > { %3355 = vmatpush3.bf16.msra.mxu0 (!%p904_p2), %v1037_v1  ;;  %vm1146_vm3 = vcmask (!%p904_p2), 1046528   ;;  %v1095_v14 = vsel (!%p904_p2), %vm1035_vm0, %v1023_v2, 0  ;;  %v1172_v26 = vsel (!%p904_p2), %vm1035_vm0, %v3169_v10, 0  ;;  %v3643_v32 = vld [vmem:[%s3751_s3 + $0x8] sm:$0xff] (!%p904_p2)   ;;  %v3644_v33 = vld [vmem:[%s3751_s3] sm:$0xff] (!%p904_p2)   ;;  %vm1286_vm4 = vcmask (!%p904_p2), 130048  }
  0x3b   : > { %3593 = vmatprep.subr.msk.bf16.mxu0 (!%p904_p2), %vm1035_vm0, %v1023_v2  ;;  %3372 = vmatprep.subr.bf16.mxu1 (!%p904_p2), %v3643_v32  ;;  %v1513_v34 = vld [vmem:[%s3766_s19] sm:$0x3] (!%p904_p2)  ;;  %vm1613_vm5 = vcmask (!%p904_p2), 1043456   ;;  %vm1606_vm6 = vcmask (!%p904_p2), 64512   ;;  %vm1724_vm7 = vcmask (!%p904_p2), 1045504   ;;  %s4159_s7 = sld [smem:[#allocation5_spill]] (!%p904_p2) }
  0x3c   : > { %3373 = vmatpush3.bf16.msra.mxu1 (!%p904_p2), %v3643_v32  ;;  %v1515_v35 = vsel (!%p904_p2), %vm1035_vm0, %v1513_v34, 0  ;;  %v3172_v36 = vld [vmem:[%s3741_s25] ss:$0 sm:$0xff] (!%p904_p2)  ;;  %s4160_s10 = sld [smem:[#allocation6_spill]] (!%p904_p2)  ;;  %vm3706_vm8 = vmmov (!%p904_p2), 0   ;;  %s4161_s11 = sld [smem:[#allocation12_spill]] (!%p904_p2) }
  0x3d   : > { %3378 = vmatprep.subr.bf16.mxu1 (!%p904_p2), %v3644_v33  ;;  %v3173_v38 = vld [vmem:[%s3746_s29] ss:$0 sm:$0xff] (!%p904_p2)  ;;  %s4162_s15 = sld [smem:[#allocation9_spill]] (!%p904_p2)  ;;  %s4163_s16 = sld [smem:[#allocation7_spill]] (!%p904_p2)  ;;  %vm2315_vm9 = vcmask (!%p904_p2), 261120   ;;  %vm3063_vm11 = vcmask (!%p904_p2), 73728  }
  0x3e   : > { %s4164_s18 = sld [smem:[#allocation8_spill]] (!%p904_p2)  ;;  %s4165_s22 = sld [smem:[#allocation14_spill]] (!%p904_p2)  ;;  %vm3067_vm12 = vcmask (!%p904_p2), 0  }
  0x3f   : > { %s4166_s23 = sld [smem:[#allocation10_spill]] (!%p904_p2)  ;;  %s4167_s26 = sld [smem:[#allocation11_spill]] (!%p904_p2) }
  0x40   : > { %s4175_s1 = smov (!%p986_p3, %s3157_s1), 1 }
  0x41   : > { %s3280_s0 = sshll.u32 %s4175_s1, 5 }
  0x42   : > { %s990_s2 = scalar_lea.vmem %s3716_s5, %s3280_s0  ;;  %s4168_s0 = sld [smem:[#allocation13_spill]] }
  0x43   : > { %v998_v3 = vld [vmem:[%s990_s2] sm:$0xff]  ;;  %v999_v4 = vld [vmem:[%s990_s2 + $0x8] sm:$0xff]  ;;  %v1000_v5 = vld [vmem:[%s990_s2 + $0x10] sm:$0xff] }
  0x44   : > { %v1004_v6 = vrot.slane %v999_v4, 7  ;;  %v1011_v7 = vrot.slane %v998_v3, 7  ;;  %v1024_v8 = vpack.c.bf16 %v999_v4, %v998_v3  ;;  %v1001_v9 = vld [vmem:[%s990_s2 + $0x18] sm:$0xff]  ;;  %v1147_v11 = vrot.slane %v998_v3, 1  ;;  %s4169_s2 = sld [smem:[#allocation15_spill]] }
  0x45   : > { %v1148_v12 = vrot.slane %v999_v4, 1  ;;  %v1025_v13 = vpack.c.bf16 %v1001_v9, %v1000_v5  ;;  %v1005_v15 = vrot.slane %v1001_v9, 7  ;;  %v1013_v16 = vrot.slane %v1000_v5, 7  ;;  %v3645_v4 = vld [vmem:[%s3751_s3 + $0x10] sm:$0xff]  }
  0x46   : > { %3356 = vmatprep.mubr.msk.bf16.mxu0 %vm1028_vm1, %v1024_v8  ;;  %v1012_v17 = vsel %vm1010_vm2, %v1011_v7, %v1004_v6  ;;  %v1019_v18 = vsel %vm1010_vm2, %v1004_v6, %v1011_v7  ;;  %v1150_v27 = vrot.slane %v1000_v5, 1  ;;  %v1151_v28 = vrot.slane %v1001_v9, 1 }
  0x47   : > { %3357 = vmatmul.mubr.msk.bf16.vlgmr.msra.gmra.mrb[0].mxu0 %vm1028_vm1, %v1025_v13  ;;  %v1021_v19 = vpack.c.bf16 %v1012_v17, %v1019_v18  ;;  %v1014_v20 = vsel %vm1010_vm2, %v1013_v16, %v1005_v15  ;;  %v1020_v21 = vsel %vm1010_vm2, %v1005_v15, %v1013_v16  ;;  %v1149_v22 = vsel %vm1146_vm3, %v1147_v11, %v1148_v12  ;;  %v3192_v17 = vld [vmem:[%s3776_s30 + $0x4] sm:$0xf] }
  0x48   : > { %3361 = vmatpush3.bf16.msra.mxu0 %v1095_v14  ;;  %v1159_v23 = vsel %vm1146_vm3, %v1148_v12, %v1147_v11  ;;  %v1022_v24 = vpack.c.bf16 %v1014_v20, %v1020_v21  ;;  %v1152_v29 = vsel %vm1146_vm3, %v1150_v27, %v1151_v28  ;;  %v1160_v30 = vsel %vm1146_vm3, %v1151_v28, %v1150_v27  ;;  %v3187_v20 = vld [vmem:[%s3756_s8] ss:$0 sm:$0xff] }
  0x49   : > { %3362 = vmatprep.mubr.msk.bf16.mxu0 %vm1028_vm1, %v1021_v19  ;;  %3594 = vmatprep.subr.msk.bf16.mxu0 %vm1035_vm0, %v3169_v10  ;;  %v1161_v25 = vpack.c.bf16 %v1159_v23, %v1149_v22  ;;  %v1162_v31 = vpack.c.bf16 %v1160_v30, %v1152_v29  ;;  %v1615_v18 = vsel %vm1613_vm5, %v3192_v17, 0  ;;  %v1601_v19 = vld [vmem:[%s3776_s30] sm:$0xf] }
  0x4a   : > { %v3188_v22 = vld [vmem:[%s3761_s14] ss:$0 sm:$0xff] }
  0x4b   : > { %v3191_v23 = vld [vmem:[%s3771_s24] ss:$0 sm:$0xff] }
  0x53   : > { %3363 = vmatmul.mubr.msk.bf16.vlgmr.msra.gmra.mrb[0].mxu0 %vm1028_vm1, %v1022_v24 }
  0x54   : > { %3367 = vmatpush3.bf16.msra.mxu0 %v1172_v26  ;;  %3368 = vmatprep.mubr.msk.bf16.mxu0 %vm1028_vm1, %v1161_v25 }
  0x55   : > { %3595 = vmatprep.subr.msk.bf16.mxu0 %vm1035_vm0, %v1513_v34 }
  0x5f   : > { %3369 = vmatmul.mubr.msk.bf16.vlgmr.msra.gmra.mrb[0].mxu0 %vm1028_vm1, %v1162_v31 }
  0x60   : > { %3392 = vmatprep.mubr.msk.bf16.mxu0 %vm1028_vm1, %v1024_v8  ;;  %3391 = vmatpush3.bf16.msra.mxu0 %v1515_v35 }
  0x67   : > { %3393 = vmatmul.mubr.msk.bf16.vlgmr.msra.gmra.mrb[4].mxu0 %vm1028_vm1, %v1025_v13 }
 0x132   : > { %v3370_v37 = vpop.f32.mrb[0].mxu0 }
 0x133   : > { %v1236_v39 = vmul.f32 %v3370_v37, %v3172_v36  ;;  %v1208_v40 = vpop.f32.mrb[1].mxu0 }
 0x134   : > { %v1234_v41 = vmul.f32 %v3172_v36, %v1208_v40  ;;  %v3371_v42 = vpop.f32.mrb[2].mxu0 }
 0x135   : > { %v1247_v43 = vadd.f32 %v3173_v38, %v1236_v39  ;;  %v1237_v44 = vmul.f32 %v3371_v42, %v3172_v36  ;;  %v1211_v45 = vpop.f32.mrb[3].mxu0 }
 0x136   : > { %v1245_v46 = vadd.f32 %v3173_v38, %v1234_v41  ;;  %v1235_v47 = vmul.f32 %v3172_v36, %v1211_v45 }
 0x137   : > { %v1251_v48 = vmax.f32 %v1247_v43, 0.0  ;;  %v1248_v49 = vadd.f32 %v3173_v38, %v1237_v44 }
 0x138   : > { %v1249_v50 = vmax.f32 %v1245_v46, 0.0  ;;  %v1246_v51 = vadd.f32 %v3173_v38, %v1235_v47 }
 0x139   : > { %v1252_v52 = vmax.f32 %v1248_v49, 0.0  ;;  %v1263_v53 = vrot.slane %v1251_v48, 7  ;;  %v1406_v54 = vrot.slane %v1251_v48, 1 }
 0x13a   : > { %v1250_v55 = vmax.f32 %v1246_v51, 0.0  ;;  %v1261_v56 = vrot.slane %v1249_v50, 7  ;;  %v1403_v60 = vrot.slane %v1249_v50, 1  ;;  %v3394_v13 = vpop.f32.mrb[4].mxu0  ;;  %v1673_v51 = vsel %vm1613_vm5, %v1601_v19, 0 }
 0x13b   : > { %v1256_v57 = vrot.slane %v1252_v52, 7  ;;  %v1407_v58 = vrot.slane %v1252_v52, 1  ;;  %v1276_v59 = vpack.c.bf16 %v1252_v52, %v1251_v48  ;;  %v1551_v14 = vpop.f32.mrb[5].mxu0  ;;  %v1575_v29 = vadd.f32 %v3394_v13, %v3191_v23 }
 0x13c   : > { %v1255_v61 = vrot.slane %v1250_v55, 7  ;;  %v1404_v62 = vrot.slane %v1250_v55, 1  ;;  %v1275_v63 = vpack.c.bf16 %v1250_v55, %v1249_v50  ;;  %v3395_v15 = vpop.f32.mrb[6].mxu0 }
 0x13d   : > { %v1264_v0 = vsel %vm1010_vm2, %v1263_v53, %v1256_v57  ;;  %v1270_v1 = vsel %vm1010_vm2, %v1256_v57, %v1263_v53  ;;  %v1408_v2 = vsel %vm1146_vm3, %v1406_v54, %v1407_v58  ;;  %v1416_v3 = vsel %vm1146_vm3, %v1407_v58, %v1406_v54  ;;  %v1554_v16 = vpop.f32.mrb[7].mxu0  ;;  %v3197_v54 = vld [vmem:[%s3776_s30 + $0x8] sm:$0xf] }
 0x13e   : > { %3374 = vmatprep.mubr.msk.bf16.mxu1 %vm1286_vm4, %v1275_v63  ;;  %v1262_v5 = vsel %vm1010_vm2, %v1261_v56, %v1255_v61  ;;  %v1269_v6 = vsel %vm1010_vm2, %v1255_v61, %v1261_v56  ;;  %v1272_v7 = vpack.c.bf16 %v1264_v0, %v1270_v1  ;;  %v1405_v8 = vsel %vm1146_vm3, %v1403_v60, %v1404_v62 }
 0x13f   : > { %3375 = vmatmul.mubr.msk.bf16.vlgmr.msra.gmra.mrb[0].mxu1 %vm1286_vm4, %v1276_v59  ;;  %v1271_v9 = vpack.c.bf16 %v1262_v5, %v1269_v6  ;;  %v1415_v10 = vsel %vm1146_vm3, %v1404_v62, %v1403_v60  ;;  %v1418_v11 = vpack.c.bf16 %v1416_v3, %v1408_v2  ;;  %v1576_v41 = vadd.f32 %v3395_v15, %v3191_v23 }
 0x140   : > { %3379 = vmatpush3.bf16.msra.mxu1 %v3644_v33  ;;  %v1417_v12 = vpack.c.bf16 %v1415_v10, %v1405_v8  ;;  %v1573_v33 = vadd.f32 %v3191_v23, %v1551_v14  ;;  %v1574_v44 = vadd.f32 %v3191_v23, %v1554_v16  ;;  %v1750_v1 = vsel %vm1613_vm5, %v3197_v54, 0  ;;  %v3646_v8 = vld [vmem:[%s3791_s20 + $0x8] sm:$0xff]   ;;  %v3200_v10 = vld [vmem:[%s3781_s6] ss:$0 sm:$0xff] }
 0x141   : > { %3380 = vmatprep.mubr.msk.bf16.mxu1 %vm1286_vm4, %v1271_v9  ;;  %3384 = vmatprep.subr.bf16.mxu1 %v3645_v4  ;;  %v3647_v9 = vld [vmem:[%s3791_s20] sm:$0xff]  }
 0x142   : > { %3414 = vmatprep.subr.bf16.mxu0 %v3646_v8 }
 0x143   : > { %3415 = vmatpush3.bf16.msra.mxu0 %v3646_v8 }
 0x144   : > { %3420 = vmatprep.subr.bf16.mxu0 %v3647_v9 }
 0x14b   : > { %3381 = vmatmul.mubr.msk.bf16.vlgmr.msra.gmra.mrb[0].mxu1 %vm1286_vm4, %v1272_v7 }
 0x14c   : > { %3385 = vmatpush3.bf16.msra.mxu1 %v3645_v4  ;;  %3386 = vmatprep.mubr.msk.bf16.mxu1 %vm1286_vm4, %v1417_v12  ;;  %v3201_v12 = vld [vmem:[%s3786_s12] ss:$0 sm:$0xff] }
 0x14d   : > { %3596 = vmatprep.subr.msk.bf16.mxu1 %vm1613_vm5, %v3192_v17 }
 0x157   : > { %3387 = vmatmul.mubr.msk.bf16.vlgmr.msra.gmra.mrb[0].mxu1 %vm1286_vm4, %v1418_v11 }
 0x158   : > { %3397 = vmatpush3.bf16.msra.mxu1 %v1615_v18 }
 0x159   : > { %3597 = vmatprep.subr.msk.bf16.mxu1 %vm1613_vm5, %v1601_v19 }
 0x22a   : > { %v3388_v21 = vpop.f32.mrb[0].mxu1 }
 0x22b   : > { %v1496_v24 = vmul.f32 %v3388_v21, %v3187_v20  ;;  %v1468_v25 = vpop.f32.mrb[1].mxu1 }
 0x22c   : > { %v1494_v26 = vmul.f32 %v3187_v20, %v1468_v25  ;;  %v3389_v27 = vpop.f32.mrb[2].mxu1 }
 0x22d   : > { %v1507_v28 = vadd.f32 %v3188_v22, %v1496_v24  ;;  %v1497_v30 = vmul.f32 %v3389_v27, %v3187_v20  ;;  %v1471_v31 = vpop.f32.mrb[3].mxu1 }
 0x22e   : > { %v1505_v32 = vadd.f32 %v3188_v22, %v1494_v26  ;;  %v1495_v34 = vmul.f32 %v3187_v20, %v1471_v31 }
 0x22f   : > { %v1511_v35 = vmax.f32 %v1507_v28, 0.0  ;;  %v1508_v36 = vadd.f32 %v3188_v22, %v1497_v30 }
 0x230   : > { %v1509_v37 = vmax.f32 %v1505_v32, 0.0  ;;  %v1506_v38 = vadd.f32 %v3188_v22, %v1495_v34 }
 0x231   : > { %v3945_v39 = vadd.f32 %v1575_v29, %v1511_v35  ;;  %v1512_v40 = vmax.f32 %v1508_v36, 0.0 }
 0x232   : > { %v3947_v42 = vadd.f32 %v1573_v33, %v1509_v37  ;;  %v1510_v43 = vmax.f32 %v1506_v38, 0.0 }
 0x233   : > { %v3949_v45 = vadd.f32 %v1576_v41, %v1512_v40  ;;  %v1591_v58 = vrot.slane %v3945_v39, 6  ;;  %v1728_v4 = vrot.slane %v3945_v39, 2 }
 0x234   : > { %v3951_v46 = vadd.f32 %v1574_v44, %v1510_v43  ;;  %v1589_v47 = vrot.slane %v3947_v42, 6  ;;  %v1725_v59 = vrot.slane %v3947_v42, 2  ;;  %v3648_v44 = vld [vmem:[%s3791_s20 + $0x10] sm:$0xff]  }
 0x235   : > { %v1603_v50 = vpack.c.bf16 %v3949_v45, %v3945_v39  ;;  %v1584_v56 = vrot.slane %v3949_v45, 6  ;;  %v1729_v3 = vrot.slane %v3949_v45, 2 }
 0x236   : > { %v1583_v48 = vrot.slane %v3951_v46, 6  ;;  %v1602_v49 = vpack.c.bf16 %v3951_v46, %v3947_v42  ;;  %v1726_v57 = vrot.slane %v3951_v46, 2 }
 0x237   : > { %v1592_v60 = vsel %vm1035_vm0, %v1591_v58, %v1584_v56  ;;  %v1598_v61 = vsel %vm1035_vm0, %v1584_v56, %v1591_v58  ;;  %v1730_v5 = vsel %vm1724_vm7, %v1728_v4, %v1729_v3  ;;  %v1738_v6 = vsel %vm1724_vm7, %v1729_v3, %v1728_v4  ;;  %v3215_v58 = vld [vmem:[%s4159_s7] ss:$0 sm:$0xff]  ;;  %s4170_s7 = sld [smem:[#allocation16_spill]] }
 0x238   : > { %3398 = vmatprep.mubr.msk.bf16.mxu1 %vm1606_vm6, %v1602_v49  ;;  %v1590_v52 = vsel %vm1035_vm0, %v1589_v47, %v1583_v48  ;;  %v1597_v53 = vsel %vm1035_vm0, %v1583_v48, %v1589_v47  ;;  %v1727_v62 = vsel %vm1724_vm7, %v1725_v59, %v1726_v57  ;;  %v1737_v63 = vsel %vm1724_vm7, %v1726_v57, %v1725_v59 }
 0x239   : > { %3399 = vmatmul.mubr.msk.bf16.vlgmr.msra.gmra.mrb[4].mxu1 %vm1606_vm6, %v1603_v50  ;;  %v1599_v55 = vpack.c.bf16 %v1590_v52, %v1597_v53  ;;  %v1600_v0 = vpack.c.bf16 %v1592_v60, %v1598_v61  ;;  %v1739_v2 = vpack.c.bf16 %v1737_v63, %v1727_v62  ;;  %v1740_v7 = vpack.c.bf16 %v1738_v6, %v1730_v5  ;;  %v3216_v60 = vld [vmem:[%s4160_s10] ss:$0 sm:$0xff]  ;;  %s4171_s10 = sld [smem:[#allocation3_spill]] }
 0x23a   : > { %3403 = vmatpush3.bf16.msra.mxu1 %v1673_v51  ;;  %v3705_v56 = vmov 0.0  }
 0x23b   : > { %3404 = vmatprep.mubr.msk.bf16.mxu1 %vm1606_vm6, %v1599_v55  ;;  %3598 = vmatprep.subr.msk.bf16.mxu1 %vm1613_vm5, %v3197_v54  ;;  %v3217_v55 = vld [vmem:[%s3806_s17 + $0x4] sm:$0xf] }
 0x23c   : > { %v2114_v57 = vsel %vm1613_vm5, %v3217_v55, 0 }
 0x245   : > { %3405 = vmatmul.mubr.msk.bf16.vlgmr.msra.gmra.mrb[4].mxu1 %vm1606_vm6, %v1600_v0 }
 0x246   : > { %3409 = vmatpush3.bf16.msra.mxu1 %v1750_v1  ;;  %3410 = vmatprep.mubr.msk.bf16.mxu1 %vm1606_vm6, %v1739_v2 }
 0x247   : > { %3432 = vmatprep.subr.bf16.mxu1 %v3705_v56 }
 0x251   : > { %3411 = vmatmul.mubr.msk.bf16.vlgmr.msra.gmra.mrb[4].mxu1 %vm1606_vm6, %v1740_v7 }
 0x252   : > { %3433 = vmatpush3.bf16.msra.mxu1 %v2114_v57  ;;  %3434 = vmatprep.mubr.msk.bf16.mxu1 %vm3706_vm8, %v3705_v56 }
 0x253   : > { %3438 = vmatprep.subr.bf16.mxu1 %v3705_v56 }
 0x324   : > { %v3412_v11 = vpop.f32.mrb[4].mxu1 }
 0x325   : > { %v1814_v13 = vmul.f32 %v3412_v11, %v3200_v10  ;;  %v1786_v14 = vpop.f32.mrb[5].mxu1 }
 0x326   : > { %v1812_v15 = vmul.f32 %v3200_v10, %v1786_v14  ;;  %v3413_v16 = vpop.f32.mrb[6].mxu1 }
 0x327   : > { %v1825_v17 = vadd.f32 %v3201_v12, %v1814_v13  ;;  %v1815_v18 = vmul.f32 %v3413_v16, %v3200_v10  ;;  %v1789_v19 = vpop.f32.mrb[7].mxu1 }
 0x328   : > { %v1823_v20 = vadd.f32 %v3201_v12, %v1812_v15  ;;  %v1813_v21 = vmul.f32 %v3200_v10, %v1789_v19 }
 0x329   : > { %v1829_v22 = vmax.f32 %v1825_v17, 0.0  ;;  %v1826_v23 = vadd.f32 %v3201_v12, %v1815_v18  ;;  %v2106_v17 = vld [vmem:[%s3806_s17] sm:$0xf] }
 0x32a   : > { %v1827_v24 = vmax.f32 %v1823_v20, 0.0  ;;  %v1824_v25 = vadd.f32 %v3201_v12, %v1813_v21  ;;  %v2161_v20 = vsel %vm1613_vm5, %v2106_v17, 0 }
 0x32b   : > { %v1830_v26 = vmax.f32 %v1826_v23, 0.0  ;;  %v1841_v27 = vrot.slane %v1829_v22, 6  ;;  %v1983_v28 = vrot.slane %v1829_v22, 2 }
 0x32c   : > { %v1828_v29 = vmax.f32 %v1824_v25, 0.0  ;;  %v1839_v30 = vrot.slane %v1827_v24, 6  ;;  %v1980_v34 = vrot.slane %v1827_v24, 2 }
 0x32d   : > { %v1834_v31 = vrot.slane %v1830_v26, 6  ;;  %v1854_v32 = vpack.c.bf16 %v1830_v26, %v1829_v22  ;;  %v1984_v33 = vrot.slane %v1830_v26, 2 }
 0x32e   : > { %v1833_v35 = vrot.slane %v1828_v29, 6  ;;  %v1981_v36 = vrot.slane %v1828_v29, 2  ;;  %v1853_v37 = vpack.c.bf16 %v1828_v29, %v1827_v24  ;;  %v2507_v29 = vld [vmem:[%s4161_s11] sm:$0xf]  ;;  %s4172_s11 = sld [smem:[#allocation2_spill]] }
 0x32f   : > { %v1842_v38 = vsel %vm1035_vm0, %v1841_v27, %v1834_v31  ;;  %v1848_v40 = vsel %vm1035_vm0, %v1834_v31, %v1841_v27  ;;  %v1985_v41 = vsel %vm1724_vm7, %v1983_v28, %v1984_v33  ;;  %v1993_v43 = vsel %vm1724_vm7, %v1984_v33, %v1983_v28  ;;  %v3220_v27 = vld [vmem:[%s3806_s17 + $0x8] sm:$0xf]  ;;  %v3649_v31 = vld [vmem:[%s4162_s15 + $0x10] sm:$0xff]   ;;  %v3222_v33 = vld [vmem:[%s4163_s16] ss:$0 sm:$0xff] }
 0x330   : > { %3416 = vmatprep.mubr.msk.bf16.mxu0 %vm1286_vm4, %v1853_v37  ;;  %v1840_v47 = vsel %vm1035_vm0, %v1839_v30, %v1833_v35  ;;  %v1847_v48 = vsel %vm1035_vm0, %v1833_v35, %v1839_v30  ;;  %v1850_v49 = vpack.c.bf16 %v1842_v38, %v1848_v40  ;;  %v1982_v50 = vsel %vm1724_vm7, %v1980_v34, %v1981_v36  ;;  %v3223_v35 = vld [vmem:[%s4164_s18] ss:$0 sm:$0xff]  ;;  %s4173_s18 = sld [smem:[#allocation4_spill]] }
 0x331   : > { %3417 = vmatmul.mubr.msk.bf16.vlgmr.msra.gmra.mrb[8].mxu0 %vm1286_vm4, %v1854_v32  ;;  %v1849_v51 = vpack.c.bf16 %v1840_v47, %v1847_v48  ;;  %v1992_v52 = vsel %vm1724_vm7, %v1981_v36, %v1980_v34  ;;  %v1995_v53 = vpack.c.bf16 %v1993_v43, %v1985_v41  ;;  %v2218_v28 = vsel %vm1613_vm5, %v3220_v27, 0  ;;  %v3650_v32 = vld [vmem:[%s4162_s15 + $0x18] sm:$0xff]  }
 0x332   : > { %3421 = vmatpush3.bf16.msra.mxu0 %v3647_v9  ;;  %v1994_v54 = vpack.c.bf16 %v1992_v52, %v1982_v50  ;;  %v2509_v30 = vsel %vm1613_vm5, %v2507_v29, 0 }
 0x333   : > { %3422 = vmatprep.mubr.msk.bf16.mxu0 %vm1286_vm4, %v1849_v51  ;;  %3426 = vmatprep.subr.bf16.mxu0 %v3648_v44  ;;  %v3651_v51 = vld [vmem:[%s4162_s15] sm:$0xff]  }
 0x334   : > { %s993_s16 = scalar_lea.vmem %s4172_s11, %s4175_s1 }
 0x33d   : > { %3423 = vmatmul.mubr.msk.bf16.vlgmr.msra.gmra.mrb[8].mxu0 %vm1286_vm4, %v1850_v49 }
 0x33e   : > { %3427 = vmatpush3.bf16.msra.mxu0 %v3648_v44  ;;  %3428 = vmatprep.mubr.msk.bf16.mxu0 %vm1286_vm4, %v1994_v54 }
 0x33f   : > { %3450 = vmatprep.subr.bf16.mxu0 %v3705_v56 }
 0x349   : > { %3429 = vmatmul.mubr.msk.bf16.vlgmr.msra.gmra.mrb[8].mxu0 %vm1286_vm4, %v1995_v53 }
 0x34a   : > { %3454 = vmatprep.mubr.msk.bf16.mxu0 %vm3706_vm8, %v3705_v56  ;;  %3451 = vmatpush3.bf16.msra.mxu0 %v3649_v31 }
 0x34b   : > { %3452 = vmatprep.subr.bf16.mxu0 %v3705_v56 }
 0x34e   : > { %3453 = vmatpush3.bf16.msra.mxu0 %v3650_v32  ;;  %v3658_v32 = vld [vmem:[%s3861_s4 + $0x10] sm:$0xff]  }
 0x34f   : > { %3458 = vmatprep.subr.bf16.mxu0 %v3705_v56 }
 0x41c   : > { %v3430_v59 = vpop.f32.mrb[8].mxu0 }
 0x41d   : > { %v2073_v61 = vmul.f32 %v3430_v59, %v3215_v58  ;;  %v2045_v62 = vpop.f32.mrb[9].mxu0 }
 0x41e   : > { %v2071_v63 = vmul.f32 %v3215_v58, %v2045_v62  ;;  %v3431_v0 = vpop.f32.mrb[10].mxu0 }
 0x41f   : > { %v2084_v1 = vadd.f32 %v3216_v60, %v2073_v61  ;;  %v2074_v2 = vmul.f32 %v3431_v0, %v3215_v58  ;;  %v2048_v3 = vpop.f32.mrb[11].mxu0  ;;  %v3652_v0 = vld [vmem:[%s4162_s15 + $0x8] sm:$0xff]  }
 0x420   : > { %v2082_v4 = vadd.f32 %v3216_v60, %v2071_v63  ;;  %v2072_v5 = vmul.f32 %v3215_v58, %v2048_v3  ;;  %v3653_v3 = vld [vmem:[%s4162_s15 + $0x20] sm:$0xff]  }
 0x421   : > { %v2088_v6 = vmax.f32 %v2084_v1, 0.0  ;;  %v2085_v7 = vadd.f32 %v3216_v60, %v2074_v2 }
 0x422   : > { %v2086_v8 = vmax.f32 %v2082_v4, 0.0  ;;  %v2083_v9 = vadd.f32 %v3216_v60, %v2072_v5  ;;  %v3654_v4 = vld [vmem:[%s4162_s15 + $0x28] sm:$0xff]  }
 0x423   : > { %v2092_v10 = vadd.f32 %v2088_v6, %v3945_v39  ;;  %v2089_v11 = vmax.f32 %v2085_v7, 0.0  ;;  %v3655_v5 = vld [vmem:[%s4165_s22 + $0x8] sm:$0xff]   ;;  %v3241_v6 = vld [vmem:[%s4166_s23] ss:$0 sm:$0xff]  ;;  %s996_s23 = scalar_lea.vmem %s3876_s13, %s4175_s1 }
 0x424   : > { %v2090_v12 = vadd.f32 %v2086_v8, %v3947_v42  ;;  %v2087_v13 = vmax.f32 %v2083_v9, 0.0  ;;  %v3242_v8 = vld [vmem:[%s4167_s26] ss:$0 sm:$0xff] }
 0x425   : > { %v2093_v14 = vadd.f32 %v2089_v11, %v3949_v45  ;;  %v3244_v11 = vld [vmem:[%s4168_s0] ss:$0 sm:$0xff] }
 0x426   : > { %v2094_v15 = vsub.f32 %v2090_v12, %v2092_v10  ;;  %v2091_v16 = vadd.f32 %v2087_v13, %v3951_v46 }
 0x428   : > { %v2095_v18 = vsub.f32 %v2091_v16, %v2093_v14  ;;  %v2100_v19 = vrot.slane %v2094_v15, 7  ;;  %v2204_v21 = vrot.slane %v2094_v15, 1 }
 0x42a   : > { %v2097_v22 = vrot.slane %v2095_v18, 7  ;;  %v2107_v23 = vpack.c.bf16 %v2095_v18, %v2094_v15  ;;  %v2205_v24 = vrot.slane %v2095_v18, 1 }
 0x42c   : > { %3435 = vmatmul.mubr.msk.bf16.vlgmr.msra.gmra.mrb[8].mxu1 %vm1606_vm6, %v2107_v23  ;;  %v2101_v39 = vsel %vm1010_vm2, %v2100_v19, %v2097_v22  ;;  %v2104_v42 = vsel %vm1010_vm2, %v2097_v22, %v2100_v19  ;;  %v2206_v45 = vsel %vm1146_vm3, %v2204_v21, %v2205_v24  ;;  %v2210_v46 = vsel %vm1146_vm3, %v2205_v24, %v2204_v21 }
 0x42d   : > { %3439 = vmatpush3.bf16.msra.mxu1 %v2161_v20  ;;  %3440 = vmatprep.mubr.msk.bf16.mxu1 %vm3706_vm8, %v3705_v56  ;;  %v2105_v25 = vpack.c.bf16 %v2101_v39, %v2104_v42  ;;  %v2211_v26 = vpack.c.bf16 %v2210_v46, %v2206_v45 }
 0x42e   : > { %3444 = vmatprep.subr.bf16.mxu1 %v3705_v56 }
 0x438   : > { %3441 = vmatmul.mubr.msk.bf16.vlgmr.msra.gmra.mrb[8].mxu1 %vm1606_vm6, %v2105_v25  ;;  %v3657_v25 = vld [vmem:[%s4165_s22 + $0x10] sm:$0xff]  }
 0x439   : > { %3445 = vmatpush3.bf16.msra.mxu1 %v2218_v28  ;;  %3446 = vmatprep.mubr.msk.bf16.mxu1 %vm3706_vm8, %v3705_v56 }
 0x43a   : > { %3474 = vmatprep.subr.bf16.mxu1 %v3705_v56 }
 0x444   : > { %3447 = vmatmul.mubr.msk.bf16.vlgmr.msra.gmra.mrb[8].mxu1 %vm1606_vm6, %v2211_v26 }
 0x445   : > { %3475 = vmatpush3.bf16.msra.mxu1 %v2509_v30  ;;  %3476 = vmatprep.mubr.msk.bf16.mxu1 %vm3706_vm8, %v3705_v56 }
 0x446   : > { %3498 = vmatprep.subr.bf16.mxu1 %v3705_v56 }
 0x44c   : > { %3477 = vmatmul.mubr.msk.bf16.vlgmr.msra.gmra.mrb[12].mxu1 %vm1606_vm6, %v2107_v23  ;;  %v3656_v23 = vld [vmem:[%s4165_s22] sm:$0xff]  }
 0x44d   : > { %3502 = vmatprep.mubr.msk.bf16.mxu1 %vm3706_vm8, %v3705_v56  ;;  %3499 = vmatpush3.bf16.msra.mxu1 %v3658_v32 }
 0x44e   : > { %3500 = vmatprep.subr.bf16.mxu1 %v3705_v56 }
 0x517   : > { %v2254_v34 = vpop.f32.mrb[8].mxu1 }
 0x518   : > { %v2270_v36 = vmul.f32 %v3222_v33, %v2254_v34  ;;  %v3448_v37 = vpop.f32.mrb[9].mxu1  ;;  %v3255_v34 = vld [vmem:[%s4169_s2] ss:$0 sm:$0xff] }
 0x519   : > { %v2257_v38 = vpop.f32.mrb[10].mxu1 }
 0x51a   : > { %v2279_v40 = vadd.f32 %v3223_v35, %v2270_v36  ;;  %v2271_v41 = vmul.f32 %v3222_v33, %v2257_v38  ;;  %v3449_v43 = vpop.f32.mrb[11].mxu1  ;;  %v3659_v33 = vld [vmem:[%s3861_s4 + $0x18] sm:$0xff]   ;;  %v3256_v36 = vld [vmem:[%s4170_s7] ss:$0 sm:$0xff] }
 0x51b   : > { %3501 = vmatpush3.bf16.msra.mxu1 %v3659_v33 }
 0x51c   : > { %v2281_v44 = vmax.f32 %v2279_v40, 0.0  ;;  %v2280_v47 = vadd.f32 %v3223_v35, %v2271_v41  ;;  %3506 = vmatprep.subr.bf16.mxu1 %v3705_v56 }
 0x51e   : > { %v2282_v48 = vmax.f32 %v2280_v47, 0.0  ;;  %v2287_v49 = vrot.slane %v2281_v44, 7  ;;  %v2416_v52 = vrot.slane %v2281_v44, 1 }
 0x51f   : > { %v2545_v50 = vpop.f32.mrb[12].mxu1 }
 0x520   : > { %v2284_v53 = vrot.slane %v2282_v48, 7  ;;  %v2297_v54 = vpack.c.bf16 %v2282_v48, %v2281_v44  ;;  %v2417_v55 = vrot.slane %v2282_v48, 1  ;;  %v3478_v57 = vpop.f32.mrb[13].mxu1  ;;  %v2559_v16 = vadd.f32 %v3244_v11, %v2545_v50 }
 0x521   : > { %v2548_v58 = vpop.f32.mrb[14].mxu1 }
 0x522   : > { %v2288_v59 = vsel %vm1010_vm2, %v2287_v49, %v2284_v53  ;;  %v2291_v60 = vsel %vm1010_vm2, %v2284_v53, %v2287_v49  ;;  %v2418_v61 = vsel %vm1146_vm3, %v2416_v52, %v2417_v55  ;;  %v2422_v62 = vsel %vm1146_vm3, %v2417_v55, %v2416_v52  ;;  %3455 = vmatmul.mubr.msk.bf16.vlgmr.msra.gmra.mrb[12].mxu0 %vm2315_vm9, %v2297_v54  ;;  %v3479_v63 = vpop.f32.mrb[15].mxu1 }
 0x523   : > { %3459 = vmatpush3.bf16.msra.mxu0 %v3651_v51  ;;  %3462 = vmatprep.mubr.msk.bf16.mxu0 %vm3706_vm8, %v3705_v56  ;;  %v2292_v1 = vpack.c.bf16 %v2288_v59, %v2291_v60  ;;  %v2423_v2 = vpack.c.bf16 %v2422_v62, %v2418_v61  ;;  %v2560_v19 = vadd.f32 %v3244_v11, %v2548_v58  ;;  %v3660_v51 = vld [vmem:[%s3861_s4] sm:$0xff]   ;;  %v3661_v61 = vld [vmem:[%s3861_s4 + $0x8] sm:$0xff]  }
 0x524   : > { %3460 = vmatprep.subr.bf16.mxu0 %v3705_v56 }
 0x527   : > { %3461 = vmatpush3.bf16.msra.mxu0 %v3652_v0  ;;  %v3662_v0 = vld [vmem:[%s3861_s4 + $0x20] sm:$0xff]  }
 0x528   : > { %3466 = vmatprep.subr.bf16.mxu0 %v3705_v56 }
 0x52e   : > { %3463 = vmatmul.mubr.msk.bf16.vlgmr.msra.gmra.mrb[12].mxu0 %vm2315_vm9, %v2292_v1  ;;  %v3663_v1 = vld [vmem:[%s3861_s4 + $0x28] sm:$0xff]  }
 0x52f   : > { %3467 = vmatpush3.bf16.msra.mxu0 %v3653_v3  ;;  %3470 = vmatprep.mubr.msk.bf16.mxu0 %vm3706_vm8, %v3705_v56  ;;  %v3707_v3 = vmov 0  }
 0x530   : > { %3468 = vmatprep.subr.bf16.mxu0 %v3705_v56  ;;  %3642 = vset.pattern.permute.xlu0 %v3707_v3 }
 0x533   : > { %3469 = vmatpush3.bf16.msra.mxu0 %v3654_v4  ;;  %v3053_v4 = vld [vmem:[%s993_s16] sm:$0x1] }
 0x534   : > { %3480 = vmatprep.subr.bf16.mxu0 %v3705_v56  ;;  %3055 = vperm.xlu0 %3642, %v3053_v4  }
 0x53a   : > { %3471 = vmatmul.mubr.msk.bf16.vlgmr.msra.gmra.mrb[12].mxu0 %vm2315_vm9, %v2423_v2  ;;  %v3664_v2 = vld [vmem:[%s4171_s10] sm:$0xff]  }
 0x53b   : > { %3482 = vmatprep.mubr.msk.bf16.mxu0 %vm3706_vm8, %v3705_v56  ;;  %3481 = vmatpush3.bf16.msra.mxu0 %v3655_v5  ;;  %v3274_v5 = vld [vmem:[%s3866_s27] ss:$0 sm:$0xff] }
 0x53c   : > { %3486 = vmatprep.subr.bf16.mxu0 %v3705_v56 }
 0x60d   : > { %v2478_v7 = vpop.f32.mrb[12].mxu0 }
 0x60e   : > { %v2494_v9 = vmul.f32 %v3241_v6, %v2478_v7  ;;  %v3472_v10 = vpop.f32.mrb[13].mxu0  ;;  %v3275_v7 = vld [vmem:[%s3871_s9] ss:$0 sm:$0xff] }
 0x60f   : > { %v2481_v12 = vpop.f32.mrb[14].mxu0 }
 0x610   : > { %v2503_v13 = vadd.f32 %v3242_v8, %v2494_v9  ;;  %v2495_v14 = vmul.f32 %v3241_v6, %v2481_v12  ;;  %v3473_v15 = vpop.f32.mrb[15].mxu0 }
 0x612   : > { %v2505_v17 = vmax.f32 %v2503_v13, 0.0  ;;  %v2504_v18 = vadd.f32 %v3242_v8, %v2495_v14 }
 0x614   : > { %v4074_v20 = vadd.f32 %v2559_v16, %v2505_v17  ;;  %v2506_v21 = vmax.f32 %v2504_v18, 0.0 }
 0x616   : > { %v4076_v22 = vadd.f32 %v2560_v19, %v2506_v21  ;;  %v2567_v42 = vrot.slane %v4074_v20, 6  ;;  %v2679_v28 = vrot.slane %v4074_v20, 2 }
 0x618   : > { %v2575_v24 = vpack.c.bf16 %v4076_v22, %v4074_v20  ;;  %v2564_v39 = vrot.slane %v4076_v22, 6  ;;  %v2680_v27 = vrot.slane %v4076_v22, 2 }
 0x61a   : > { %3483 = vmatmul.mubr.msk.bf16.vlgmr.msra.gmra.mrb[16].mxu0 %vm1286_vm4, %v2575_v24  ;;  %v2568_v45 = vsel %vm1035_vm0, %v2567_v42, %v2564_v39  ;;  %v2571_v46 = vsel %vm1035_vm0, %v2564_v39, %v2567_v42  ;;  %v2681_v29 = vsel %vm1724_vm7, %v2679_v28, %v2680_v27  ;;  %v2685_v30 = vsel %vm1724_vm7, %v2680_v27, %v2679_v28  ;;  %v3056_v28 = vpop.permute.xlu0 %3055 }
 0x61b   : > { %3487 = vmatpush3.bf16.msra.mxu0 %v3656_v23  ;;  %3488 = vmatprep.mubr.msk.bf16.mxu0 %vm3706_vm8, %v3705_v56  ;;  %v2572_v26 = vpack.c.bf16 %v2568_v45, %v2571_v46  ;;  %v2686_v31 = vpack.c.bf16 %v2685_v30, %v2681_v29 }
 0x61c   : > { %3492 = vmatprep.subr.bf16.mxu0 %v3705_v56 }
 0x626   : > { %3489 = vmatmul.mubr.msk.bf16.vlgmr.msra.gmra.mrb[16].mxu0 %vm1286_vm4, %v2572_v26 }
 0x627   : > { %3493 = vmatpush3.bf16.msra.mxu0 %v3657_v25  ;;  %3494 = vmatprep.mubr.msk.bf16.mxu0 %vm3706_vm8, %v3705_v56 }
 0x628   : > { %3522 = vmatprep.subr.bf16.mxu0 %v3705_v56 }
 0x632   : > { %3495 = vmatmul.mubr.msk.bf16.vlgmr.msra.gmra.mrb[16].mxu0 %vm1286_vm4, %v2686_v31  ;;  %v3001_v31 = vld [vmem:[%s4173_s18] sm:$0x1] }
 0x633   : > { %3524 = vmatprep.mubr.msk.bf16.mxu0 %vm3706_vm8, %v3705_v56  ;;  %3523 = vmatpush3.bf16.msra.mxu0 %v3664_v2 }
 0x705   : > { %v2733_v35 = vpop.f32.mrb[16].mxu0 }
 0x706   : > { %v2749_v37 = vmul.f32 %v3255_v34, %v2733_v35  ;;  %v3496_v38 = vpop.f32.mrb[17].mxu0 }
 0x707   : > { %v2736_v40 = vpop.f32.mrb[18].mxu0 }
 0x708   : > { %v2758_v41 = vadd.f32 %v3256_v36, %v2749_v37  ;;  %v2750_v43 = vmul.f32 %v3255_v34, %v2736_v40  ;;  %v3497_v44 = vpop.f32.mrb[19].mxu0 }
 0x70a   : > { %v2760_v47 = vmax.f32 %v2758_v41, 0.0  ;;  %v2759_v48 = vadd.f32 %v3256_v36, %v2750_v43 }
 0x70c   : > { %v2761_v49 = vmax.f32 %v2759_v48, 0.0  ;;  %v2766_v50 = vrot.slane %v2760_v47, 6  ;;  %v2894_v52 = vrot.slane %v2760_v47, 2 }
 0x70e   : > { %v2763_v53 = vrot.slane %v2761_v49, 6  ;;  %v2776_v54 = vpack.c.bf16 %v2761_v49, %v2760_v47  ;;  %v2895_v55 = vrot.slane %v2761_v49, 2 }
 0x710   : > { %v2767_v57 = vsel %vm1035_vm0, %v2766_v50, %v2763_v53  ;;  %v2770_v58 = vsel %vm1035_vm0, %v2763_v53, %v2766_v50  ;;  %v2896_v59 = vsel %vm1724_vm7, %v2894_v52, %v2895_v55  ;;  %v2900_v60 = vsel %vm1724_vm7, %v2895_v55, %v2894_v52  ;;  %3503 = vmatmul.mubr.msk.bf16.vlgmr.msra.gmra.mrb[16].mxu1 %vm2315_vm9, %v2776_v54 }
 0x711   : > { %3507 = vmatpush3.bf16.msra.mxu1 %v3660_v51  ;;  %3510 = vmatprep.mubr.msk.bf16.mxu1 %vm3706_vm8, %v3705_v56  ;;  %v2771_v62 = vpack.c.bf16 %v2767_v57, %v2770_v58  ;;  %v2901_v63 = vpack.c.bf16 %v2900_v60, %v2896_v59 }
 0x712   : > { %3508 = vmatprep.subr.bf16.mxu1 %v3705_v56 }
 0x715   : > { %3509 = vmatpush3.bf16.msra.mxu1 %v3661_v61 }
 0x716   : > { %3514 = vmatprep.subr.bf16.mxu1 %v3705_v56 }
 0x71c   : > { %3511 = vmatmul.mubr.msk.bf16.vlgmr.msra.gmra.mrb[16].mxu1 %vm2315_vm9, %v2771_v62 }
 0x71d   : > { %3515 = vmatpush3.bf16.msra.mxu1 %v3662_v0  ;;  %3518 = vmatprep.mubr.msk.bf16.mxu1 %vm3706_vm8, %v3705_v56 }
 0x71e   : > { %3516 = vmatprep.subr.bf16.mxu1 %v3705_v56 }
 0x721   : > { %3517 = vmatpush3.bf16.msra.mxu1 %v3663_v1 }
 0x728   : > { %3519 = vmatmul.mubr.msk.bf16.vlgmr.msra.gmra.mrb[16].mxu1 %vm2315_vm9, %v2901_v63 }
 0x7fb   : > { %v2956_v6 = vpop.f32.mrb[16].mxu1 }
 0x7fc   : > { %v2972_v8 = vmul.f32 %v3274_v5, %v2956_v6  ;;  %v3520_v9 = vpop.f32.mrb[17].mxu1 }
 0x7fd   : > { %v2959_v10 = vpop.f32.mrb[18].mxu1 }
 0x7fe   : > { %v2981_v11 = vadd.f32 %v3275_v7, %v2972_v8  ;;  %v2973_v12 = vmul.f32 %v3274_v5, %v2959_v10  ;;  %v3521_v13 = vpop.f32.mrb[19].mxu1 }
 0x800   : > { %v2983_v56 = vmax.f32 %v2981_v11, 0.0  ;;  %v2982_v14 = vadd.f32 %v3275_v7, %v2973_v12 }
 0x802   : > { %v2985_v15 = vadd.f32 %v2983_v56, %v4074_v20  ;;  %v2984_v16 = vmax.f32 %v2982_v14, 0.0  ;;  %v3051_v20 = vlaneseq }
 0x804   : > { %v2986_v17 = vadd.f32 %v2984_v16, %v4076_v22  ;;  %v2987_v18 = vsel %vm1286_vm4, %v2985_v15, 0.0  ;;  %v3058_v27 = vshrl.u32 %v3051_v20, 7  ;;  %v3052_v30 = vand.u32 127, %v3051_v20 }
 0x806   : > { %v2988_v19 = vsel %vm1286_vm4, %v2986_v17, 0.0  ;;  %v3059_v22 = vsub.s32 0, %v3058_v27 }
 0x807   : > { %v2989_v21 = vadd.f32 %v2988_v19, %v2987_v18 }
 0x808   : > { %v3060_v29 = vrot.slane %v3056_v28, %v3059_v22 }
 0x809   : > { %v2990_v23 = vrot.slane %v2989_v21, 4 }
 0x80a   : > { %vm3061_vm10 = vcmp.eq.s32.totalorder %v3052_v30, %v3060_v29 }
 0x80b   : > { %v2991_v24 = vadd.f32 %v2990_v23, %v2989_v21 }
 0x80d   : > { %v2992_v39 = vrot.slane %v2991_v24, 2 }
 0x80f   : > { %v2993_v42 = vadd.f32 %v2992_v39, %v2991_v24 }
 0x811   : > { %v2994_v45 = vrot.slane %v2993_v42, 1 }
 0x813   : > { %v2995_v46 = vadd.f32 %v2994_v45, %v2993_v42 }
 0x815   : > { %v2997_v25 = vmul.f32 0.0625, %v2995_v46 }
 0x817   : > { %v2998_v26 = vpack.c.bf16 %v2997_v25, %v2997_v25 }
 0x819   : > { %3525 = vmatmul.mubr.msk.bf16.vlgmr.msra.gmra.mrb[20].mxu0 %vm1286_vm4, %v2998_v26 }
 0x8ec   : > { %v3045_v32 = vpop.f32.mrb[20].mxu0 }
 0x8ed   : > { %v3046_v33 = vadd.f32 %v3045_v32, %v3001_v31  ;;  %v3526_v34 = vpop.f32.mrb[21].mxu0 }
 0x8ee   : > { %v3048_v35 = vpop.f32.mrb[22].mxu0 }
 0x8ef   : > { %v3527_v36 = vpop.f32.mrb[23].mxu0  ;;  %v3062_v37 = vsel %vm3061_vm10, %v3046_v33, 0.0 }
 0x8f0   : > { %v3064_v38 = vsel %vm3063_vm11, %v3062_v37, 0.0 }
 0x8f1   : > { %3065 = vadd.xlane.f32.xlu0 %v3064_v38 }
 0x97e   : > { %v3066_v40 = vpop.xlane.xlu0 %3065 }
 0x97f   : > { %3068 = vst.msk [vmem:[%s996_s23] sm:$0x1] %vm3067_vm12, %v3066_v40 }
 0x980 PF: > { %s75_s28 = sadd.s32 1, %s3671_s28  }
 0x981   : > { %p72_p4 = scmp.ge.s32.totalorder %s75_s28, 4  }
 0x983   :  { %74 = sbr.rel (!%p72_p4) target bundleno = 52 (0x34), region = 229 }

</bundles_post_ra>
